<compile_context>
chip_gen: v7x
topology: tpu7x:2x2x1
jax: 0.10.0
libtpu: 0.0.40
codegen_flags: <defaults>
</compile_context>

<pallas_src>
import jax
import jax.numpy as jnp
import numpy as np
from jax.experimental import pallas as pl
from jax.experimental.pallas import tpu as pltpu

NUM_LAYERS = 5
_LANE = 128     # vreg lane width
_SUBLANE = 8    # f32 sublane count
_GELU_C = float(np.sqrt(2.0 / np.pi))


def _round_up(n, m):
    return (n + m - 1) // m * m


def _cdiv(n, m):
    return (n + m - 1) // m


def _gelu_tanh(x):
    # Exact match of the reference GELU:
    # 0.5*x*(1 + tanh(sqrt(2/pi) * (x + 0.044715*x^3)))
    return 0.5 * x * (1.0 + jnp.tanh(_GELU_C * (x + 0.044715 * (x * x * x))))


def _make_mlp_kernel(use_shortcut: bool, num_layers: int):
    def mlp_kernel(x_ref, w_ref, b_ref, o_ref):
        # x_ref: (TB, Dp) activations   w_ref: (L, Dp, Dp) bf16 (in, out)
        # b_ref: (L, 1, Dp) f32         o_ref: (TB, Dp)
        x = x_ref[...]
        if x.dtype != jnp.float32:
            x = x.astype(jnp.float32)
        mxu_dtype = w_ref.dtype  # bf16 weights -> bf16 MXU inputs, f32 accumulate
        for l in range(num_layers):          # static unrolled loop over the 5 layers
            y = jnp.dot(x.astype(mxu_dtype), w_ref[l],
                        preferred_element_type=jnp.float32) + b_ref[l]
            y = _gelu_tanh(y)                # f32 elementwise (tanh on EUP)
            if use_shortcut:                 # uniform sizes -> shapes always match
                x = x + y
            else:
                x = y
        o_ref[...] = x.astype(o_ref.dtype)

    return mlp_kernel


def _vmem_limit_bytes(need_bytes: int) -> int:
    """Per-chip VMEM cap: ~85% of physical (108 MiB v5e/v6e, ~54 MiB v7x)."""
    try:
        cap = int(pltpu.get_tpu_info().vmem_capacity_bytes)
    except Exception:
        cap = 128 << 20
    ceiling = int(cap * 0.85)
    return int(min(ceiling, max(32 << 20, 2 * need_bytes)))


def prepare_params(weights, biases, *, weight_dtype=jnp.bfloat16):
    """One-time prep of stacked (L, D, D) weights (pre-transposed to (in,out))
    and (L, 1, D) biases: lane-dense pad or tiny-D feature packing + bf16 cast.
    Returns (wp, bp, meta)."""
    L, d_in, d_out = weights.shape
    assert d_in == d_out, "stacked-weight layout requires uniform layer sizes"
    D = d_in

    pack = _LANE // D if (D < _LANE and _LANE % D == 0) else 1
    if pack > 1:
        # Pack `pack` feature groups per 128-lane row: block-diagonal weight,
        # tiled bias.  Every lane carries real data (no zero-pad waste).
        Dp = pack * D
        eye = jnp.eye(pack, dtype=weights.dtype)
        wp = jax.vmap(lambda w: jnp.kron(eye, w))(weights)   # (L, Dp, Dp) block-diag
        bp = jnp.tile(biases, (1, 1, pack))                  # (L, 1, Dp)
    else:
        # 256-wide K/N alignment for the large-D (MXU-bound) regime on v6e/v7x;
        # 128 otherwise.
        align = _LANE if D <= 512 else 256
        Dp = _round_up(D, align)
        wp = weights if Dp == D else jnp.pad(weights, ((0, 0), (0, Dp - D), (0, Dp - D)))
        bp = biases if Dp == D else jnp.pad(biases, ((0, 0), (0, 0), (0, Dp - D)))

    wp = jax.device_put(wp.astype(weight_dtype))
    bp = jax.device_put(bp.astype(jnp.float32))
    meta = {"d": D, "pack": pack, "dp": Dp}
    return wp, bp, meta


def example_deep_nn_forward(x, wp, bp, meta, *, use_shortcut: bool,
                            batch_tile: int = 512):
    """x: (B, D) f32. wp/bp/meta from prepare_params()."""
    B, D = x.shape
    L = wp.shape[0]
    g, Dp = meta["pack"], meta["dp"]
    assert D == meta["d"]

    Bg = _cdiv(B, g)                           # lane-dense rows holding real data
    TB = min(_round_up(batch_tile, _SUBLANE), _round_up(Bg, _SUBLANE))
    # Guarantee >=2 batch tiles so the "parallel" axis shards across v7x's two
    # TensorCores (harmless no-op on single-TC v5e/v6e).
    if _round_up(Bg, TB) // TB < 2 and _round_up(Bg, _SUBLANE) > _SUBLANE:
        TB = _round_up(_cdiv(Bg, 2), _SUBLANE)
    Bp = _round_up(Bg, TB)

    rows_needed = Bp * g
    xp = x if rows_needed == B else jnp.pad(x, ((0, rows_needed - B), (0, 0)))
    if g > 1:
        xp = xp.reshape(Bp, Dp)                # row-major: g batch rows per row
    elif Dp != D:
        xp = jnp.pad(xp, ((0, 0), (0, Dp - D)))

    grid = (Bp // TB,)
    w_bytes = jnp.dtype(wp.dtype).itemsize
    cost = pl.CostEstimate(
        flops=2 * L * Bp * Dp * Dp,
        transcendentals=L * Bp * Dp,
        bytes_accessed=2 * Bp * Dp * 4 + L * Dp * Dp * w_bytes + L * Dp * 4,
    )
    vmem_need = (2 * 2 * TB * Dp * 4           # in/out activation tiles, double-buffered
                 + L * Dp * Dp * w_bytes       # weights (single-buffered, resident)
                 + L * Dp * 4)                 # biases
    vmem_limit = _vmem_limit_bytes(vmem_need)

    def call(single_buffer_params: bool):
        def const_spec(shape):
            # Constant index_map -> block stays resident across batch tiles;
            # Buffered(1) avoids allocating a useless second buffer.
            if single_buffer_params:
                return pl.BlockSpec(shape, lambda i: (0,) * len(shape),
                                    pipeline_mode=pl.Buffered(1))
            return pl.BlockSpec(shape, lambda i: (0,) * len(shape))

        return pl.pallas_call(
            _make_mlp_kernel(use_shortcut, L),
            out_shape=jax.ShapeDtypeStruct((Bp, Dp), x.dtype),
            grid=grid,
            in_specs=[
                pl.BlockSpec((TB, Dp), lambda i: (i, 0)),   # activations: batch-tiled
                const_spec((L, Dp, Dp)),                    # weights: VMEM-resident
                const_spec((L, 1, Dp)),                     # biases: VMEM-resident
            ],
            out_specs=pl.BlockSpec((TB, Dp), lambda i: (i, 0)),
            compiler_params=pltpu.CompilerParams(
                dimension_semantics=("parallel",),          # independent batch tiles
                vmem_limit_bytes=vmem_limit,
            ),
            cost_estimate=cost,
        )(xp, wp, bp)

    try:
        out = call(single_buffer_params=True)
    except Exception:
        # Fallback for jax versions that reject pl.Buffered(1) on input specs;
        # correctness is unaffected, only the weight VMEM footprint doubles.
        out = call(single_buffer_params=False)

    if g > 1:
        out = out.reshape(Bp * g, D)
    if out.shape[0] != B or out.shape[1] != D:
        out = out[:B, :D]
    return out


def reference_forward(x, weights, biases, *, use_shortcut: bool):
    """Pure-JAX reference with the same bf16-weight / f32-accumulate semantics."""
    x = x.astype(jnp.float32)
    for l in range(weights.shape[0]):
        y = jnp.dot(x.astype(weights.dtype), weights[l],
                    preferred_element_type=jnp.float32)
        y = y + biases[l].astype(jnp.float32)
        y = _gelu_tanh(y)
        if use_shortcut and x.shape == y.shape:
            x = x + y
        else:
            x = y
    return x


if __name__ == "__main__":
    # Small logical shapes (hidden=32 as in the original layer_sizes demo).
    # The wrapper packs 4 batch rows per 128-lane row and runs 2 batch tiles.
    B, D = 256, 32
    use_shortcut = True

    key = jax.random.PRNGKey(0)
    kx, kw, kb = jax.random.split(key, 3)

    x = jax.random.normal(kx, (B, D), dtype=jnp.float32)
    # nn.Linear default init ~ U(-1/sqrt(in), 1/sqrt(in)); deterministic synthetic init.
    bound = 1.0 / np.sqrt(D)
    # Weights stored already transposed to (in, out); stacked over the 5 layers.
    weights = jax.random.uniform(kw, (NUM_LAYERS, D, D), jnp.float32, -bound, bound)
    biases = jax.random.uniform(kb, (NUM_LAYERS, 1, D), jnp.float32, -bound, bound)

    wp, bp, meta = prepare_params(weights, biases)      # one-time parameter prep
    out = example_deep_nn_forward(x, wp, bp, meta, use_shortcut=use_shortcut)
    out = jax.block_until_ready(out)

    ref = reference_forward(x, weights.astype(jnp.bfloat16), biases,
                            use_shortcut=use_shortcut)
    np.testing.assert_allclose(np.asarray(out), np.asarray(ref), rtol=2e-4, atol=2e-4)

    print("KERNEL_OK")
</pallas_src>

<mosaic_0001>
module attributes {stable_mosaic.version = 11 : i64} {
  func.func @mlp_kernel(%arg0: i32, %arg1: memref<32x128xf32, #tpu.memory_space<vmem>>, %arg2: memref<5x128x128xbf16, #tpu.memory_space<vmem>>, %arg3: memref<5x1x128xf32, #tpu.memory_space<vmem>>, %arg4: memref<32x128xf32, #tpu.memory_space<vmem>>) attributes {dimension_semantics = [#tpu.dimension_semantics<parallel>], iteration_bounds = array<i64: 2>, scalar_prefetch = 0 : i64, scratch_operands = 0 : i64, tpu.core_type = #tpu.core_type<tc>, window_params = [{transform_indices = @transform_0, window_bounds = array<i64: 32, 128>}, {pipeline_mode = #tpu.pipeline_mode<synchronous>, transform_indices = @transform_1, window_bounds = array<i64: 5, 128, 128>}, {pipeline_mode = #tpu.pipeline_mode<synchronous>, transform_indices = @transform_2, window_bounds = array<i64: 5, 1, 128>}, {transform_indices = @transform_3, window_bounds = array<i64: 32, 128>}]} {
    %c0 = arith.constant 0 : index
    %c0_0 = arith.constant 0 : index
    %0 = vector.load %arg1[%c0, %c0_0] : memref<32x128xf32, #tpu.memory_space<vmem>>, vector<32x128xf32>
    %1 = arith.truncf %0 : vector<32x128xf32> to vector<32x128xbf16>
    %c0_1 = arith.constant 0 : index
    %c0_2 = arith.constant 0 : index
    %c0_3 = arith.constant 0 : index
    %2 = vector.load %arg2[%c0_1, %c0_2, %c0_3] : memref<5x128x128xbf16, #tpu.memory_space<vmem>>, vector<1x128x128xbf16>
    %3 = vector.shape_cast %2 : vector<1x128x128xbf16> to vector<128x128xbf16>
    %cst = arith.constant dense<0.000000e+00> : vector<32x128xf32>
    %4 = tpu.matmul %1, %3, %cst {dimension_numbers = #tpu.dot_dimension_numbers<[1], [0], [0], [1], [0, 0, 1, 1], [], []>} : vector<32x128xbf16>, vector<128x128xbf16>, vector<32x128xf32> -> vector<32x128xf32>
    %c0_4 = arith.constant 0 : index
    %c0_5 = arith.constant 0 : index
    %c0_6 = arith.constant 0 : index
    %5 = vector.load %arg3[%c0_4, %c0_5, %c0_6] : memref<5x1x128xf32, #tpu.memory_space<vmem>>, vector<1x1x128xf32>
    %6 = vector.shape_cast %5 : vector<1x1x128xf32> to vector<1x128xf32>
    %7 = vector.broadcast %6 : vector<1x128xf32> to vector<32x128xf32>
    %8 = arith.addf %4, %7 : vector<32x128xf32>
    %cst_7 = arith.constant 5.000000e-01 : f32
    %9 = vector.broadcast %cst_7 : f32 to vector<32x128xf32>
    %10 = arith.mulf %9, %8 : vector<32x128xf32>
    %11 = arith.mulf %8, %8 : vector<32x128xf32>
    %12 = arith.mulf %11, %8 : vector<32x128xf32>
    %cst_8 = arith.constant 4.471500e-02 : f32
    %13 = vector.broadcast %cst_8 : f32 to vector<32x128xf32>
    %14 = arith.mulf %13, %12 : vector<32x128xf32>
    %15 = arith.addf %8, %14 : vector<32x128xf32>
    %cst_9 = arith.constant 0.797884583 : f32
    %16 = vector.broadcast %cst_9 : f32 to vector<32x128xf32>
    %17 = arith.mulf %16, %15 : vector<32x128xf32>
    %18 = math.tanh %17 : vector<32x128xf32>
    %cst_10 = arith.constant 1.000000e+00 : f32
    %19 = vector.broadcast %cst_10 : f32 to vector<32x128xf32>
    %20 = arith.addf %19, %18 : vector<32x128xf32>
    %21 = arith.mulf %10, %20 : vector<32x128xf32>
    %22 = arith.addf %0, %21 : vector<32x128xf32>
    %23 = arith.truncf %22 : vector<32x128xf32> to vector<32x128xbf16>
    %c1 = arith.constant 1 : index
    %c0_11 = arith.constant 0 : index
    %c0_12 = arith.constant 0 : index
    %24 = vector.load %arg2[%c1, %c0_11, %c0_12] : memref<5x128x128xbf16, #tpu.memory_space<vmem>>, vector<1x128x128xbf16>
    %25 = vector.shape_cast %24 : vector<1x128x128xbf16> to vector<128x128xbf16>
    %cst_13 = arith.constant dense<0.000000e+00> : vector<32x128xf32>
    %26 = tpu.matmul %23, %25, %cst_13 {dimension_numbers = #tpu.dot_dimension_numbers<[1], [0], [0], [1], [0, 0, 1, 1], [], []>} : vector<32x128xbf16>, vector<128x128xbf16>, vector<32x128xf32> -> vector<32x128xf32>
    %c1_14 = arith.constant 1 : index
    %c0_15 = arith.constant 0 : index
    %c0_16 = arith.constant 0 : index
    %27 = vector.load %arg3[%c1_14, %c0_15, %c0_16] : memref<5x1x128xf32, #tpu.memory_space<vmem>>, vector<1x1x128xf32>
    %28 = vector.shape_cast %27 : vector<1x1x128xf32> to vector<1x128xf32>
    %29 = vector.broadcast %28 : vector<1x128xf32> to vector<32x128xf32>
    %30 = arith.addf %26, %29 : vector<32x128xf32>
    %cst_17 = arith.constant 5.000000e-01 : f32
    %31 = vector.broadcast %cst_17 : f32 to vector<32x128xf32>
    %32 = arith.mulf %31, %30 : vector<32x128xf32>
    %33 = arith.mulf %30, %30 : vector<32x128xf32>
    %34 = arith.mulf %33, %30 : vector<32x128xf32>
    %cst_18 = arith.constant 4.471500e-02 : f32
    %35 = vector.broadcast %cst_18 : f32 to vector<32x128xf32>
    %36 = arith.mulf %35, %34 : vector<32x128xf32>
    %37 = arith.addf %30, %36 : vector<32x128xf32>
    %cst_19 = arith.constant 0.797884583 : f32
    %38 = vector.broadcast %cst_19 : f32 to vector<32x128xf32>
    %39 = arith.mulf %38, %37 : vector<32x128xf32>
    %40 = math.tanh %39 : vector<32x128xf32>
    %cst_20 = arith.constant 1.000000e+00 : f32
    %41 = vector.broadcast %cst_20 : f32 to vector<32x128xf32>
    %42 = arith.addf %41, %40 : vector<32x128xf32>
    %43 = arith.mulf %32, %42 : vector<32x128xf32>
    %44 = arith.addf %22, %43 : vector<32x128xf32>
    %45 = arith.truncf %44 : vector<32x128xf32> to vector<32x128xbf16>
    %c2 = arith.constant 2 : index
    %c0_21 = arith.constant 0 : index
    %c0_22 = arith.constant 0 : index
    %46 = vector.load %arg2[%c2, %c0_21, %c0_22] : memref<5x128x128xbf16, #tpu.memory_space<vmem>>, vector<1x128x128xbf16>
    %47 = vector.shape_cast %46 : vector<1x128x128xbf16> to vector<128x128xbf16>
    %cst_23 = arith.constant dense<0.000000e+00> : vector<32x128xf32>
    %48 = tpu.matmul %45, %47, %cst_23 {dimension_numbers = #tpu.dot_dimension_numbers<[1], [0], [0], [1], [0, 0, 1, 1], [], []>} : vector<32x128xbf16>, vector<128x128xbf16>, vector<32x128xf32> -> vector<32x128xf32>
    %c2_24 = arith.constant 2 : index
    %c0_25 = arith.constant 0 : index
    %c0_26 = arith.constant 0 : index
    %49 = vector.load %arg3[%c2_24, %c0_25, %c0_26] : memref<5x1x128xf32, #tpu.memory_space<vmem>>, vector<1x1x128xf32>
    %50 = vector.shape_cast %49 : vector<1x1x128xf32> to vector<1x128xf32>
    %51 = vector.broadcast %50 : vector<1x128xf32> to vector<32x128xf32>
    %52 = arith.addf %48, %51 : vector<32x128xf32>
    %cst_27 = arith.constant 5.000000e-01 : f32
    %53 = vector.broadcast %cst_27 : f32 to vector<32x128xf32>
    %54 = arith.mulf %53, %52 : vector<32x128xf32>
    %55 = arith.mulf %52, %52 : vector<32x128xf32>
    %56 = arith.mulf %55, %52 : vector<32x128xf32>
    %cst_28 = arith.constant 4.471500e-02 : f32
    %57 = vector.broadcast %cst_28 : f32 to vector<32x128xf32>
    %58 = arith.mulf %57, %56 : vector<32x128xf32>
    %59 = arith.addf %52, %58 : vector<32x128xf32>
    %cst_29 = arith.constant 0.797884583 : f32
    %60 = vector.broadcast %cst_29 : f32 to vector<32x128xf32>
    %61 = arith.mulf %60, %59 : vector<32x128xf32>
    %62 = math.tanh %61 : vector<32x128xf32>
    %cst_30 = arith.constant 1.000000e+00 : f32
    %63 = vector.broadcast %cst_30 : f32 to vector<32x128xf32>
    %64 = arith.addf %63, %62 : vector<32x128xf32>
    %65 = arith.mulf %54, %64 : vector<32x128xf32>
    %66 = arith.addf %44, %65 : vector<32x128xf32>
    %67 = arith.truncf %66 : vector<32x128xf32> to vector<32x128xbf16>
    %c3 = arith.constant 3 : index
    %c0_31 = arith.constant 0 : index
    %c0_32 = arith.constant 0 : index
    %68 = vector.load %arg2[%c3, %c0_31, %c0_32] : memref<5x128x128xbf16, #tpu.memory_space<vmem>>, vector<1x128x128xbf16>
    %69 = vector.shape_cast %68 : vector<1x128x128xbf16> to vector<128x128xbf16>
    %cst_33 = arith.constant dense<0.000000e+00> : vector<32x128xf32>
    %70 = tpu.matmul %67, %69, %cst_33 {dimension_numbers = #tpu.dot_dimension_numbers<[1], [0], [0], [1], [0, 0, 1, 1], [], []>} : vector<32x128xbf16>, vector<128x128xbf16>, vector<32x128xf32> -> vector<32x128xf32>
    %c3_34 = arith.constant 3 : index
    %c0_35 = arith.constant 0 : index
    %c0_36 = arith.constant 0 : index
    %71 = vector.load %arg3[%c3_34, %c0_35, %c0_36] : memref<5x1x128xf32, #tpu.memory_space<vmem>>, vector<1x1x128xf32>
    %72 = vector.shape_cast %71 : vector<1x1x128xf32> to vector<1x128xf32>
    %73 = vector.broadcast %72 : vector<1x128xf32> to vector<32x128xf32>
    %74 = arith.addf %70, %73 : vector<32x128xf32>
    %cst_37 = arith.constant 5.000000e-01 : f32
    %75 = vector.broadcast %cst_37 : f32 to vector<32x128xf32>
    %76 = arith.mulf %75, %74 : vector<32x128xf32>
    %77 = arith.mulf %74, %74 : vector<32x128xf32>
    %78 = arith.mulf %77, %74 : vector<32x128xf32>
    %cst_38 = arith.constant 4.471500e-02 : f32
    %79 = vector.broadcast %cst_38 : f32 to vector<32x128xf32>
    %80 = arith.mulf %79, %78 : vector<32x128xf32>
    %81 = arith.addf %74, %80 : vector<32x128xf32>
    %cst_39 = arith.constant 0.797884583 : f32
    %82 = vector.broadcast %cst_39 : f32 to vector<32x128xf32>
    %83 = arith.mulf %82, %81 : vector<32x128xf32>
    %84 = math.tanh %83 : vector<32x128xf32>
    %cst_40 = arith.constant 1.000000e+00 : f32
    %85 = vector.broadcast %cst_40 : f32 to vector<32x128xf32>
    %86 = arith.addf %85, %84 : vector<32x128xf32>
    %87 = arith.mulf %76, %86 : vector<32x128xf32>
    %88 = arith.addf %66, %87 : vector<32x128xf32>
    %89 = arith.truncf %88 : vector<32x128xf32> to vector<32x128xbf16>
    %c4 = arith.constant 4 : index
    %c0_41 = arith.constant 0 : index
    %c0_42 = arith.constant 0 : index
    %90 = vector.load %arg2[%c4, %c0_41, %c0_42] : memref<5x128x128xbf16, #tpu.memory_space<vmem>>, vector<1x128x128xbf16>
    %91 = vector.shape_cast %90 : vector<1x128x128xbf16> to vector<128x128xbf16>
    %cst_43 = arith.constant dense<0.000000e+00> : vector<32x128xf32>
    %92 = tpu.matmul %89, %91, %cst_43 {dimension_numbers = #tpu.dot_dimension_numbers<[1], [0], [0], [1], [0, 0, 1, 1], [], []>} : vector<32x128xbf16>, vector<128x128xbf16>, vector<32x128xf32> -> vector<32x128xf32>
    %c4_44 = arith.constant 4 : index
    %c0_45 = arith.constant 0 : index
    %c0_46 = arith.constant 0 : index
    %93 = vector.load %arg3[%c4_44, %c0_45, %c0_46] : memref<5x1x128xf32, #tpu.memory_space<vmem>>, vector<1x1x128xf32>
    %94 = vector.shape_cast %93 : vector<1x1x128xf32> to vector<1x128xf32>
    %95 = vector.broadcast %94 : vector<1x128xf32> to vector<32x128xf32>
    %96 = arith.addf %92, %95 : vector<32x128xf32>
    %cst_47 = arith.constant 5.000000e-01 : f32
    %97 = vector.broadcast %cst_47 : f32 to vector<32x128xf32>
    %98 = arith.mulf %97, %96 : vector<32x128xf32>
    %99 = arith.mulf %96, %96 : vector<32x128xf32>
    %100 = arith.mulf %99, %96 : vector<32x128xf32>
    %cst_48 = arith.constant 4.471500e-02 : f32
    %101 = vector.broadcast %cst_48 : f32 to vector<32x128xf32>
    %102 = arith.mulf %101, %100 : vector<32x128xf32>
    %103 = arith.addf %96, %102 : vector<32x128xf32>
    %cst_49 = arith.constant 0.797884583 : f32
    %104 = vector.broadcast %cst_49 : f32 to vector<32x128xf32>
    %105 = arith.mulf %104, %103 : vector<32x128xf32>
    %106 = math.tanh %105 : vector<32x128xf32>
    %cst_50 = arith.constant 1.000000e+00 : f32
    %107 = vector.broadcast %cst_50 : f32 to vector<32x128xf32>
    %108 = arith.addf %107, %106 : vector<32x128xf32>
    %109 = arith.mulf %98, %108 : vector<32x128xf32>
    %110 = arith.addf %88, %109 : vector<32x128xf32>
    %c0_51 = arith.constant 0 : index
    %c0_52 = arith.constant 0 : index
    %111 = vector.load %arg4[%c0_51, %c0_52] : memref<32x128xf32, #tpu.memory_space<vmem>>, vector<32x128xf32>
    tpu.vector_store %arg4[%c0_51, %c0_52], %110 {strides = array<i32>} : memref<32x128xf32, #tpu.memory_space<vmem>>, vector<32x128xf32>,
    return
  }
  func.func @transform_0(%arg0: i32) -> (i32, i32) {
    %c0_i32 = arith.constant 0 : i32
    %c0_i32_0 = arith.constant 0 : i32
    return %arg0, %c0_i32 : i32, i32
  }
  func.func @transform_1(%arg0: i32) -> (i32, i32, i32) {
    %c0_i32 = arith.constant 0 : i32
    %c0_i32_0 = arith.constant 0 : i32
    %c0_i32_1 = arith.constant 0 : i32
    %c0_i32_2 = arith.constant 0 : i32
    return %c0_i32, %c0_i32_0, %c0_i32_1 : i32, i32, i32
  }
  func.func @transform_2(%arg0: i32) -> (i32, i32, i32) {
    %c0_i32 = arith.constant 0 : i32
    %c0_i32_0 = arith.constant 0 : i32
    %c0_i32_1 = arith.constant 0 : i32
    %c0_i32_2 = arith.constant 0 : i32
    return %c0_i32, %c0_i32_0, %c0_i32_1 : i32, i32, i32
  }
  func.func @transform_3(%arg0: i32) -> (i32, i32) {
    %c0_i32 = arith.constant 0 : i32
    %c0_i32_0 = arith.constant 0 : i32
    return %arg0, %c0_i32 : i32, i32
  }
}

module attributes {stable_mosaic.version = 11 : i64} {
  func.func @mlp_kernel(%arg0: i32, %arg1: memref<32x128xf32, #tpu.memory_space<vmem>>, %arg2: memref<5x128x128xbf16, #tpu.memory_space<vmem>>, %arg3: memref<5x1x128xf32, #tpu.memory_space<vmem>>, %arg4: memref<32x128xf32, #tpu.memory_space<vmem>>) attributes {dimension_semantics = [#tpu.dimension_semantics<parallel>], iteration_bounds = array<i64: 2>, scalar_prefetch = 0 : i64, scratch_operands = 0 : i64, tpu.core_type = #tpu.core_type<tc>, window_params = [{transform_indices = @transform_0, window_bounds = array<i64: 32, 128>}, {pipeline_mode = #tpu.pipeline_mode<synchronous>, transform_indices = @transform_1, window_bounds = array<i64: 5, 128, 128>}, {pipeline_mode = #tpu.pipeline_mode<synchronous>, transform_indices = @transform_2, window_bounds = array<i64: 5, 1, 128>}, {transform_indices = @transform_3, window_bounds = array<i64: 32, 128>}]} {
    %c0 = arith.constant 0 : index
    %c0_0 = arith.constant 0 : index
    %0 = vector.load %arg1[%c0, %c0_0] : memref<32x128xf32, #tpu.memory_space<vmem>>, vector<32x128xf32>
    %1 = arith.truncf %0 : vector<32x128xf32> to vector<32x128xbf16>
    %c0_1 = arith.constant 0 : index
    %c0_2 = arith.constant 0 : index
    %c0_3 = arith.constant 0 : index
    %2 = vector.load %arg2[%c0_1, %c0_2, %c0_3] : memref<5x128x128xbf16, #tpu.memory_space<vmem>>, vector<1x128x128xbf16>
    %3 = vector.shape_cast %2 : vector<1x128x128xbf16> to vector<128x128xbf16>
    %cst = arith.constant dense<0.000000e+00> : vector<32x128xf32>
    %4 = tpu.matmul %1, %3, %cst {dimension_numbers = #tpu.dot_dimension_numbers<[1], [0], [0], [1], [0, 0, 1, 1], [], []>} : vector<32x128xbf16>, vector<128x128xbf16>, vector<32x128xf32> -> vector<32x128xf32>
    %c0_4 = arith.constant 0 : index
    %c0_5 = arith.constant 0 : index
    %c0_6 = arith.constant 0 : index
    %5 = vector.load %arg3[%c0_4, %c0_5, %c0_6] : memref<5x1x128xf32, #tpu.memory_space<vmem>>, vector<1x1x128xf32>
    %6 = vector.shape_cast %5 : vector<1x1x128xf32> to vector<1x128xf32>
    %7 = vector.broadcast %6 : vector<1x128xf32> to vector<32x128xf32>
    %8 = arith.addf %4, %7 : vector<32x128xf32>
    %cst_7 = arith.constant 5.000000e-01 : f32
    %9 = vector.broadcast %cst_7 : f32 to vector<32x128xf32>
    %10 = arith.mulf %9, %8 : vector<32x128xf32>
    %11 = arith.mulf %8, %8 : vector<32x128xf32>
    %12 = arith.mulf %11, %8 : vector<32x128xf32>
    %cst_8 = arith.constant 4.471500e-02 : f32
    %13 = vector.broadcast %cst_8 : f32 to vector<32x128xf32>
    %14 = arith.mulf %13, %12 : vector<32x128xf32>
    %15 = arith.addf %8, %14 : vector<32x128xf32>
    %cst_9 = arith.constant 0.797884583 : f32
    %16 = vector.broadcast %cst_9 : f32 to vector<32x128xf32>
    %17 = arith.mulf %16, %15 : vector<32x128xf32>
    %18 = math.tanh %17 : vector<32x128xf32>
    %cst_10 = arith.constant 1.000000e+00 : f32
    %19 = vector.broadcast %cst_10 : f32 to vector<32x128xf32>
    %20 = arith.addf %19, %18 : vector<32x128xf32>
    %21 = arith.mulf %10, %20 : vector<32x128xf32>
    %22 = arith.addf %0, %21 : vector<32x128xf32>
    %23 = arith.truncf %22 : vector<32x128xf32> to vector<32x128xbf16>
    %c1 = arith.constant 1 : index
    %c0_11 = arith.constant 0 : index
    %c0_12 = arith.constant 0 : index
    %24 = vector.load %arg2[%c1, %c0_11, %c0_12] : memref<5x128x128xbf16, #tpu.memory_space<vmem>>, vector<1x128x128xbf16>
    %25 = vector.shape_cast %24 : vector<1x128x128xbf16> to vector<128x128xbf16>
    %cst_13 = arith.constant dense<0.000000e+00> : vector<32x128xf32>
    %26 = tpu.matmul %23, %25, %cst_13 {dimension_numbers = #tpu.dot_dimension_numbers<[1], [0], [0], [1], [0, 0, 1, 1], [], []>} : vector<32x128xbf16>, vector<128x128xbf16>, vector<32x128xf32> -> vector<32x128xf32>
    %c1_14 = arith.constant 1 : index
    %c0_15 = arith.constant 0 : index
    %c0_16 = arith.constant 0 : index
    %27 = vector.load %arg3[%c1_14, %c0_15, %c0_16] : memref<5x1x128xf32, #tpu.memory_space<vmem>>, vector<1x1x128xf32>
    %28 = vector.shape_cast %27 : vector<1x1x128xf32> to vector<1x128xf32>
    %29 = vector.broadcast %28 : vector<1x128xf32> to vector<32x128xf32>
    %30 = arith.addf %26, %29 : vector<32x128xf32>
    %cst_17 = arith.constant 5.000000e-01 : f32
    %31 = vector.broadcast %cst_17 : f32 to vector<32x128xf32>
    %32 = arith.mulf %31, %30 : vector<32x128xf32>
    %33 = arith.mulf %30, %30 : vector<32x128xf32>
    %34 = arith.mulf %33, %30 : vector<32x128xf32>
    %cst_18 = arith.constant 4.471500e-02 : f32
    %35 = vector.broadcast %cst_18 : f32 to vector<32x128xf32>
    %36 = arith.mulf %35, %34 : vector<32x128xf32>
    %37 = arith.addf %30, %36 : vector<32x128xf32>
    %cst_19 = arith.constant 0.797884583 : f32
    %38 = vector.broadcast %cst_19 : f32 to vector<32x128xf32>
    %39 = arith.mulf %38, %37 : vector<32x128xf32>
    %40 = math.tanh %39 : vector<32x128xf32>
    %cst_20 = arith.constant 1.000000e+00 : f32
    %41 = vector.broadcast %cst_20 : f32 to vector<32x128xf32>
    %42 = arith.addf %41, %40 : vector<32x128xf32>
    %43 = arith.mulf %32, %42 : vector<32x128xf32>
    %44 = arith.addf %22, %43 : vector<32x128xf32>
    %45 = arith.truncf %44 : vector<32x128xf32> to vector<32x128xbf16>
    %c2 = arith.constant 2 : index
    %c0_21 = arith.constant 0 : index
    %c0_22 = arith.constant 0 : index
    %46 = vector.load %arg2[%c2, %c0_21, %c0_22] : memref<5x128x128xbf16, #tpu.memory_space<vmem>>, vector<1x128x128xbf16>
    %47 = vector.shape_cast %46 : vector<1x128x128xbf16> to vector<128x128xbf16>
    %cst_23 = arith.constant dense<0.000000e+00> : vector<32x128xf32>
    %48 = tpu.matmul %45, %47, %cst_23 {dimension_numbers = #tpu.dot_dimension_numbers<[1], [0], [0], [1], [0, 0, 1, 1], [], []>} : vector<32x128xbf16>, vector<128x128xbf16>, vector<32x128xf32> -> vector<32x128xf32>
    %c2_24 = arith.constant 2 : index
    %c0_25 = arith.constant 0 : index
    %c0_26 = arith.constant 0 : index
    %49 = vector.load %arg3[%c2_24, %c0_25, %c0_26] : memref<5x1x128xf32, #tpu.memory_space<vmem>>, vector<1x1x128xf32>
    %50 = vector.shape_cast %49 : vector<1x1x128xf32> to vector<1x128xf32>
    %51 = vector.broadcast %50 : vector<1x128xf32> to vector<32x128xf32>
    %52 = arith.addf %48, %51 : vector<32x128xf32>
    %cst_27 = arith.constant 5.000000e-01 : f32
    %53 = vector.broadcast %cst_27 : f32 to vector<32x128xf32>
    %54 = arith.mulf %53, %52 : vector<32x128xf32>
    %55 = arith.mulf %52, %52 : vector<32x128xf32>
    %56 = arith.mulf %55, %52 : vector<32x128xf32>
    %cst_28 = arith.constant 4.471500e-02 : f32
    %57 = vector.broadcast %cst_28 : f32 to vector<32x128xf32>
    %58 = arith.mulf %57, %56 : vector<32x128xf32>
    %59 = arith.addf %52, %58 : vector<32x128xf32>
    %cst_29 = arith.constant 0.797884583 : f32
    %60 = vector.broadcast %cst_29 : f32 to vector<32x128xf32>
    %61 = arith.mulf %60, %59 : vector<32x128xf32>
    %62 = math.tanh %61 : vector<32x128xf32>
    %cst_30 = arith.constant 1.000000e+00 : f32
    %63 = vector.broadcast %cst_30 : f32 to vector<32x128xf32>
    %64 = arith.addf %63, %62 : vector<32x128xf32>
    %65 = arith.mulf %54, %64 : vector<32x128xf32>
    %66 = arith.addf %44, %65 : vector<32x128xf32>
    %67 = arith.truncf %66 : vector<32x128xf32> to vector<32x128xbf16>
    %c3 = arith.constant 3 : index
    %c0_31 = arith.constant 0 : index
    %c0_32 = arith.constant 0 : index
    %68 = vector.load %arg2[%c3, %c0_31, %c0_32] : memref<5x128x128xbf16, #tpu.memory_space<vmem>>, vector<1x128x128xbf16>
    %69 = vector.shape_cast %68 : vector<1x128x128xbf16> to vector<128x128xbf16>
    %cst_33 = arith.constant dense<0.000000e+00> : vector<32x128xf32>
    %70 = tpu.matmul %67, %69, %cst_33 {dimension_numbers = #tpu.dot_dimension_numbers<[1], [0], [0], [1], [0, 0, 1, 1], [], []>} : vector<32x128xbf16>, vector<128x128xbf16>, vector<32x128xf32> -> vector<32x128xf32>
    %c3_34 = arith.constant 3 : index
    %c0_35 = arith.constant 0 : index
    %c0_36 = arith.constant 0 : index
    %71 = vector.load %arg3[%c3_34, %c0_35, %c0_36] : memref<5x1x128xf32, #tpu.memory_space<vmem>>, vector<1x1x128xf32>
    %72 = vector.shape_cast %71 : vector<1x1x128xf32> to vector<1x128xf32>
    %73 = vector.broadcast %72 : vector<1x128xf32> to vector<32x128xf32>
    %74 = arith.addf %70, %73 : vector<32x128xf32>
    %cst_37 = arith.constant 5.000000e-01 : f32
    %75 = vector.broadcast %cst_37 : f32 to vector<32x128xf32>
    %76 = arith.mulf %75, %74 : vector<32x128xf32>
    %77 = arith.mulf %74, %74 : vector<32x128xf32>
    %78 = arith.mulf %77, %74 : vector<32x128xf32>
    %cst_38 = arith.constant 4.471500e-02 : f32
    %79 = vector.broadcast %cst_38 : f32 to vector<32x128xf32>
    %80 = arith.mulf %79, %78 : vector<32x128xf32>
    %81 = arith.addf %74, %80 : vector<32x128xf32>
    %cst_39 = arith.constant 0.797884583 : f32
    %82 = vector.broadcast %cst_39 : f32 to vector<32x128xf32>
    %83 = arith.mulf %82, %81 : vector<32x128xf32>
    %84 = math.tanh %83 : vector<32x128xf32>
    %cst_40 = arith.constant 1.000000e+00 : f32
    %85 = vector.broadcast %cst_40 : f32 to vector<32x128xf32>
    %86 = arith.addf %85, %84 : vector<32x128xf32>
    %87 = arith.mulf %76, %86 : vector<32x128xf32>
    %88 = arith.addf %66, %87 : vector<32x128xf32>
    %89 = arith.truncf %88 : vector<32x128xf32> to vector<32x128xbf16>
    %c4 = arith.constant 4 : index
    %c0_41 = arith.constant 0 : index
    %c0_42 = arith.constant 0 : index
    %90 = vector.load %arg2[%c4, %c0_41, %c0_42] : memref<5x128x128xbf16, #tpu.memory_space<vmem>>, vector<1x128x128xbf16>
    %91 = vector.shape_cast %90 : vector<1x128x128xbf16> to vector<128x128xbf16>
    %cst_43 = arith.constant dense<0.000000e+00> : vector<32x128xf32>
    %92 = tpu.matmul %89, %91, %cst_43 {dimension_numbers = #tpu.dot_dimension_numbers<[1], [0], [0], [1], [0, 0, 1, 1], [], []>} : vector<32x128xbf16>, vector<128x128xbf16>, vector<32x128xf32> -> vector<32x128xf32>
    %c4_44 = arith.constant 4 : index
    %c0_45 = arith.constant 0 : index
    %c0_46 = arith.constant 0 : index
    %93 = vector.load %arg3[%c4_44, %c0_45, %c0_46] : memref<5x1x128xf32, #tpu.memory_space<vmem>>, vector<1x1x128xf32>
    %94 = vector.shape_cast %93 : vector<1x1x128xf32> to vector<1x128xf32>
    %95 = vector.broadcast %94 : vector<1x128xf32> to vector<32x128xf32>
    %96 = arith.addf %92, %95 : vector<32x128xf32>
    %cst_47 = arith.constant 5.000000e-01 : f32
    %97 = vector.broadcast %cst_47 : f32 to vector<32x128xf32>
    %98 = arith.mulf %97, %96 : vector<32x128xf32>
    %99 = arith.mulf %96, %96 : vector<32x128xf32>
    %100 = arith.mulf %99, %96 : vector<32x128xf32>
    %cst_48 = arith.constant 4.471500e-02 : f32
    %101 = vector.broadcast %cst_48 : f32 to vector<32x128xf32>
    %102 = arith.mulf %101, %100 : vector<32x128xf32>
    %103 = arith.addf %96, %102 : vector<32x128xf32>
    %cst_49 = arith.constant 0.797884583 : f32
    %104 = vector.broadcast %cst_49 : f32 to vector<32x128xf32>
    %105 = arith.mulf %104, %103 : vector<32x128xf32>
    %106 = math.tanh %105 : vector<32x128xf32>
    %cst_50 = arith.constant 1.000000e+00 : f32
    %107 = vector.broadcast %cst_50 : f32 to vector<32x128xf32>
    %108 = arith.addf %107, %106 : vector<32x128xf32>
    %109 = arith.mulf %98, %108 : vector<32x128xf32>
    %110 = arith.addf %88, %109 : vector<32x128xf32>
    %c0_51 = arith.constant 0 : index
    %c0_52 = arith.constant 0 : index
    %111 = vector.load %arg4[%c0_51, %c0_52] : memref<32x128xf32, #tpu.memory_space<vmem>>, vector<32x128xf32>
    tpu.vector_store %arg4[%c0_51, %c0_52], %110 {strides = array<i32>} : memref<32x128xf32, #tpu.memory_space<vmem>>, vector<32x128xf32>,
    return
  }
  func.func @transform_0(%arg0: i32) -> (i32, i32) {
    %c0_i32 = arith.constant 0 : i32
    %c0_i32_0 = arith.constant 0 : i32
    return %arg0, %c0_i32 : i32, i32
  }
  func.func @transform_1(%arg0: i32) -> (i32, i32, i32) {
    %c0_i32 = arith.constant 0 : i32
    %c0_i32_0 = arith.constant 0 : i32
    %c0_i32_1 = arith.constant 0 : i32
    %c0_i32_2 = arith.constant 0 : i32
    return %c0_i32, %c0_i32_0, %c0_i32_1 : i32, i32, i32
  }
  func.func @transform_2(%arg0: i32) -> (i32, i32, i32) {
    %c0_i32 = arith.constant 0 : i32
    %c0_i32_0 = arith.constant 0 : i32
    %c0_i32_1 = arith.constant 0 : i32
    %c0_i32_2 = arith.constant 0 : i32
    return %c0_i32, %c0_i32_0, %c0_i32_1 : i32, i32, i32
  }
  func.func @transform_3(%arg0: i32) -> (i32, i32) {
    %c0_i32 = arith.constant 0 : i32
    %c0_i32_0 = arith.constant 0 : i32
    return %arg0, %c0_i32 : i32, i32
  }
}

</mosaic_0001>

<bundles_post_ra>
// kernel: tpu_custom_call.1
= control target key start
LH: loop header
LB: loop body
LE: loop exit
PB: predicated region body
PF: predicated region fallthrough
CT: control target
= control target key end

     0   :  { %8 = vsyncpa [#allocation3], 0  ;;  %s1947_s0 = inlined_call_operand.hbm [shape: f32[64,128], index: 0, kind: input, shape index: {}]   ;;  %s1948_s1 = inlined_call_operand.hbm [shape: bf16[5,128,128], index: 1, kind: input, shape index: {}]   ;;  %s1949_s2 = inlined_call_operand.vmem [shape: f32[5,1,128], index: 2, kind: input, shape index: {}]   ;;  %s1950_s3 = inlined_call_operand.hbm [shape: f32[64,128], index: 3, kind: output, shape index: {}]  }
   0x1   :  { %10 = vsyncpa [#allocation3 + $0x1], 0 }
   0x2   :  { %11 = vsyncpa [#allocation6], 0 }
   0x3   :  { %12 = vsyncpa [#allocation4], 0 }
   0x4   :  { %14 = vsyncpa [#allocation4 + $0x1], 0  ;;  %s1649_s12 = smov 0   ;;  %s1651_s13 = smov 0  }
   0x5   :  { %s1653_s14 = smov 0   ;;  %s1655_s15 = smov 0  }
   0x6 LB: > { %s1670_s16 = sadd.s32 4294967295, %s1618_s15   ;;  %s1130_s17 = sadd.s32 4294967294, %s1618_s15   ;;  %s1618_s15 = sphi %s1655_s15, %s1970_s15   ;;  %s1614_s14 = sphi %s1653_s14, %s1969_s14   ;;  %s1610_s13 = sphi %s1651_s13, %s1968_s13   ;;  %s1606_s12 = sphi %s1649_s12, %s1967_s12  }
   0x7   : > { %p40_p0 = scmp.ne.s32.totalorder %s1610_s13, %s1606_s12  ;;  %p1951_p1 = scmp.eq.s32.totalorder %s1670_s16, 0 }
   0x8   : > { %p112_p3 = scmp.eq.s32.totalorder %s1130_s17, 1  ;;  %p1131_p5 = scmp.ge.s32.totalorder %s1618_s15, 1 }
   0x9   : > { %p1679_p4 = por %p1951_p1, %p40_p0  ;;  %p119_p7 = scmp.lt.s32.totalorder %s1618_s15, 3 }
   0xa   : > { %p1684_p6 = por %p112_p3, %p40_p0  ;;  %s1620_s21 = smov [#allocation5]  }
   0xb   : > { %s1954_s18 = scalar_select %p1679_p4, 1, 0 }
   0xc   : > { %s1955_s19 = scalar_select %p1684_p6, 1, 0 }
   0xd   : > { %p1689_p8 = pnand %p1131_p5, %p119_p7  ;;  %s131_s22 = sshll.u32 %s1620_s21, 4  ;;  %s1693_s22 = int_to_ptr.vmem [resolvable:$true] %s131_s22 }
   0xe   : > { %s1705_s24 = sadd.s32 1, %s1618_s15   ;;  %s27_s25 = sadd.s32 1, %s1614_s14 }
   0xf   : > { %s1956_s20 = scalar_select %p1689_p8, 1, 0 }
  0x10   : > { %p1355_p9 = pneg %p1689_p8  ;;  %s24_s26 = ssub.s32 %s1618_s15, %s1705_s24 }
  0x11   : > { %s1490_s29 = scalar_lea.hbm %s1948_s1, 5120 }
  0x12   : > { %p1700_p11 = pnand %p1355_p9, %p1951_p1  ;;  %p1491_p12 = scmp.ne.s32.totalorder %s1948_s1, %s1490_s29 }
  0x13   : > { %p1497_p5 = scmp.lt.u32.totalorder %s1490_s29, %s1948_s1 }
  0x14   : > { %p1492_p13 = pneg %p1700_p11 }
  0x16   : > { %p1493_p0 = pnand %p1492_p13, %p1491_p12 }
  0x18   : > { %p1494_p3 = pneg %p1493_p0 }
  0x1a   : > { %p1499_p7 = pnand %p1497_p5, %p1494_p3 }
  0x1c   : > { %1502 = shalt.err (!%p1499_p7)
}
  0x1d   : > { %s1503_s7 = scalar_lea.vmem %s1693_s22, 5120  ;;  %p1511_p2 = scmp.lt.s32.totalorder %s1693_s22, %s1693_s22 }
  0x1e   : > { %p1504_p9 = scmp.ne.s32.totalorder %s1693_s22, %s1503_s7  ;;  %p1512_p6 = scmp.lt.s32.totalorder %s1503_s7, %s1503_s7 }
  0x20   : > { %p1506_p10 = pnand %p1504_p9, %p1492_p13  ;;  %p1513_p4 = por %p1512_p6, %p1511_p2 }
  0x22   : > { %p1507_p1 = pneg %p1506_p10 }
  0x24   : > { %p1514_p8 = pnand %p1513_p4, %p1507_p1 }
  0x26   : > { %1517 = shalt.err (!%p1514_p8)
}
  0x27   : > { %s1621_s8 = smov 64   ;;  %s1622_s9 = smov 4  }
  0x28   : > { %1358 = dma.hbm_to_vmem [thread:$0]  (!%p1700_p11), %s1948_s1, 5120, %s1693_s22, [#allocation6], %s1621_s8, %s1621_s8, %s1622_s9  }
  0x29   : > { %p25_p2 = scmp.eq.s32.totalorder %s24_s26, 0  ;;  %p34_p1 = scmp.ne.s32.totalorder %s1614_s14, %s1610_s13 }
  0x2a   : > { %p35_p4 = scmp.eq.s32.totalorder %s1618_s15, 0  ;;  %p1368_p6 = scmp.lt.s32.totalorder %s1618_s15, 2 }
  0x2b   : > { %s1736_s17 = scalar_select %p25_p2, %s1614_s14, %s27_s25  }
  0x2c   : > { %p36_p8 = por %p35_p4, %p34_p1  ;;  %p1958_p10 = scmp.eq.s32.totalorder %s1670_s16, 1 }
  0x2d   : > { %s148_s27 = sand.u32 1, %s1614_s14   ;;  %s1195_s28 = sshll.u32 %s1618_s15, 9 }
  0x2e   : > { %p1740_p12 = por %p1958_p10, %p34_p1  ;;  %s1134_s29 = sshll.u32 %s148_s27, 5 }
  0x2f   : > { %s1749_s4 = scalar_lea.hbm %s1947_s0, %s1195_s28  ;;  %s152_s22 = scalar_lea.vmem [#allocation2], %s1134_s29 }
  0x30   : > { %s159_s25 = sshll.u32 %s152_s22, 4  ;;  %p1751_p11 = pnand %p1368_p6, %p36_p8  ;;  %s1755_s25 = int_to_ptr.vmem [resolvable:$true] %s159_s25 }
  0x31   : > { %s1757_s5 = scalar_lea.sflag [#allocation3], %s148_s27  ;;  %s1518_s6 = scalar_lea.hbm %s1749_s4, 512 }
  0x32   : > { %p1519_p13 = scmp.ne.s32.totalorder %s1749_s4, %s1518_s6  ;;  %p1520_p0 = pneg %p1751_p11 }
  0x33   : > { %s1523_s9 = scalar_lea.hbm %s1947_s0, 1024  ;;  %p1524_p7 = scmp.lt.u32.totalorder %s1749_s4, %s1947_s0 }
  0x34   : > { %p1521_p3 = pnand %p1520_p0, %p1519_p13  ;;  %p1525_p9 = scmp.lt.u32.totalorder %s1523_s9, %s1518_s6 }
  0x35   : > { %p1527_p1 = scmp.lt.u32.totalorder %s1518_s6, %s1749_s4 }
  0x36   : > { %p1522_p5 = pneg %p1521_p3  ;;  %p1526_p2 = por %p1525_p9, %p1524_p7 }
  0x38   : > { %p1528_p4 = por %p1527_p1, %p1526_p2 }
  0x3a   : > { %p1529_p6 = pnand %p1528_p4, %p1522_p5 }
  0x3c   : > { %1532 = shalt.err (!%p1529_p6)
}
  0x3d   : > { %s1533_s27 = scalar_lea.vmem %s1755_s25, 512  ;;  %s1623_s28 = smov [#allocation2]  }
  0x3e   : > { %p1534_p8 = scmp.ne.s32.totalorder %s1755_s25, %s1533_s27  ;;  %s1538_s29 = sshll.u32 %s1623_s28, 4  ;;  %s1539_s29 = int_to_ptr.vmem [resolvable:$false] %s1538_s29 }
  0x3f   : > { %s1540_s23 = scalar_lea.vmem %s1539_s29, 1024  ;;  %p1541_p3 = scmp.lt.s32.totalorder %s1755_s25, %s1539_s29 }
  0x40   : > { %p1536_p10 = pnand %p1534_p8, %p1520_p0  ;;  %p1542_p7 = scmp.lt.s32.totalorder %s1540_s23, %s1533_s27 }
  0x42   : > { %p1537_p13 = pneg %p1536_p10  ;;  %p1543_p9 = por %p1542_p7, %p1541_p3 }
  0x44   : > { %p1544_p2 = pnand %p1543_p9, %p1537_p13 }
  0x46   : > { %1547 = shalt.err (!%p1544_p2)
}
  0x47   : > { %s1624_s30 = smov 128   ;;  %s1625_s22 = smov 8  }
  0x48   : > { %1362 = dma.hbm_to_vmem [thread:$0]  (!%p1751_p11), %s1749_s4, 512, %s1755_s25, %s1757_s5, %s1624_s30, %s1624_s30, %s1625_s22  }
  0x49   : > { %p1961_p0 = scmp.ne.s32.totalorder %s1956_s20, 0 }
  0x4a   : > { %s1788_s6 = sand.u32 (!%p1961_p0), 1, %s1610_s13   ;;  %p1962_p5 = scmp.ne.s32.totalorder (!%p1961_p0), %s1954_s18, 0 }
  0x4b   : > { %171 = sbr.rel (%p1961_p0) target bundleno = 1366 (0x556), region = 32  ;;  %s1138_s7 = sshll.u32 (!%p1961_p0), %s1788_s6, 5 }
  0x4c   : > { %s174_s8 = scalar_lea.sflag (!%p1961_p0), [#allocation3], %s1788_s6  ;;  %s1794_s9 = scalar_lea.vmem (!%p1961_p0), [#allocation2], %s1138_s7 }
  0x52   : > { %1593 = dma.done.wait (%p1962_p5), %s174_s8, 512  }
  0x53   : > { %1595 = vsyncadd (%p1962_p5), %s174_s8, 4294966784  ;;  %p1963_p11 = scmp.eq.s32.totalorder %s1670_s16, 0 }
  0x55   : > { %1597 = dma.done.wait (%p1963_p11), [#allocation6], 5120   ;;  %p1964_p1 = pmov %p1963_p11 }
  0x56   : > { %v1410_v0 = vld [vmem:[#allocation5] sm:$0xff]   ;;  %v1411_v1 = vld [vmem:[#allocation5 + $0x8] sm:$0xff]   ;;  %v1412_v2 = vld [vmem:[#allocation5 + $0x10] sm:$0xff]   ;;  %s1196_s29 = sshll.u32 %s1670_s16, 9  ;;  %s203_s23 = scalar_lea.vmem [#allocation7], %s1138_s7 }
  0x57   : > { %1599 = vsyncadd (%p1964_p1), [#allocation6], 4294962176  ;;  %1247 = vmatprep.subr.bf16.mxu0 %v1410_v0  ;;  %v1413_v3 = vld [vmem:[#allocation5 + $0x18] sm:$0xff]   ;;  %v1805_v4 = vld [vmem:[%s1794_s9] sm:$0xff]  ;;  %s1047_s30 = sshll.u32 %s203_s23, 4  ;;  %s1034_s16 = scalar_lea.sflag [#allocation4], %s1788_s6  ;;  %s1902_s30 = int_to_ptr.vmem [resolvable:$true] %s1047_s30 }
  0x58   : > { %1248 = vmatpush3.bf16.msra.mxu0 %v1410_v0  ;;  %v1808_v5 = vld [vmem:[%s1794_s9 + $0x8] sm:$0xff]  ;;  %v1414_v7 = vld [vmem:[#allocation5 + $0x20] sm:$0xff]   ;;  %v1416_v9 = vld [vmem:[#allocation5 + $0x30] sm:$0xff]   ;;  %s1548_s7 = scalar_lea.vmem %s1902_s30, 512  ;;  %s1626_s18 = smov [#allocation7]  }
  0x59   : > { %1249 = vmatprep.subr.bf16.mxu0 %v1411_v1  ;;  %v211_v6 = vpack.c.bf16 %v1808_v5, %v1805_v4  ;;  %v1415_v8 = vld [vmem:[#allocation5 + $0x28] sm:$0xff]   ;;  %v1417_v10 = vld [vmem:[#allocation5 + $0x38] sm:$0xff]   ;;  %v1813_v11 = vld [vmem:[%s1794_s9 + $0x10] sm:$0xff]  ;;  %p1549_p4 = scmp.ne.s32.totalorder %s1902_s30, %s1548_s7  ;;  %s1552_s20 = sshll.u32 %s1626_s18, 4  ;;  %s1553_s20 = int_to_ptr.vmem [resolvable:$false] %s1552_s20 }
  0x5a   : > { %v1816_v12 = vld [vmem:[%s1794_s9 + $0x18] sm:$0xff]  ;;  %v1418_v14 = vld [vmem:[#allocation5 + $0x40] sm:$0xff]   ;;  %v1419_v15 = vld [vmem:[#allocation5 + $0x48] sm:$0xff]   ;;  %s1900_s9 = scalar_lea.hbm %s1950_s3, %s1196_s29  ;;  %s1554_s4 = scalar_lea.vmem %s1553_s20, 1024 }
  0x5b   : > { %1263 = vmatprep.mubr.bf16.mxu0 %v211_v6  ;;  %v212_v13 = vpack.c.bf16 %v1816_v12, %v1813_v11  ;;  %1267 = vmatprep.subr.bf16.mxu1 %v1418_v14  ;;  %v1420_v16 = vld [vmem:[#allocation5 + $0x50] sm:$0xff]   ;;  %v1421_v17 = vld [vmem:[#allocation5 + $0x58] sm:$0xff]   ;;  %v1422_v18 = vld [vmem:[#allocation5 + $0x60] sm:$0xff]   ;;  %p1550_p6 = pnand %p1549_p4, %p1740_p12  ;;  %p1555_p10 = scmp.lt.s32.totalorder %s1902_s30, %s1553_s20 }
  0x5c   : > { %1250 = vmatpush3.bf16.msra.mxu0 %v1411_v1  ;;  %1268 = vmatpush3.bf16.msra.mxu1 %v1418_v14  ;;  %v1423_v19 = vld [vmem:[#allocation5 + $0x68] sm:$0xff]   ;;  %v1424_v20 = vld [vmem:[#allocation5 + $0x70] sm:$0xff]   ;;  %v1425_v21 = vld [vmem:[#allocation5 + $0x78] sm:$0xff]   ;;  %p1556_p13 = scmp.lt.s32.totalorder %s1554_s4, %s1548_s7 }
  0x5d   : > { %1251 = vmatprep.subr.bf16.mxu0 %v1412_v2  ;;  %1269 = vmatprep.subr.bf16.mxu1 %v1419_v15  ;;  %v1141_v22 = vld [vmem:[%s1949_s2] ss:$0 sm:$0xff]  ;;  %v1431_v14 = vld [vmem:[#allocation5 + $0xa8] sm:$0xff]   ;;  %p1551_p8 = pneg %p1550_p6 }
  0x5e   : > { %p1557_p3 = por %p1556_p13, %p1555_p10 }
  0x60   : > { %1252 = vmatpush3.bf16.msra.mxu0 %v1412_v2  ;;  %1270 = vmatpush3.bf16.msra.mxu1 %v1419_v15  ;;  %v1432_v15 = vld [vmem:[#allocation5 + $0xb0] sm:$0xff]   ;;  %p1558_p7 = pnand %p1557_p3, %p1551_p8 }
  0x61   : > { %1253 = vmatprep.subr.bf16.mxu0 %v1413_v3  ;;  %1271 = vmatprep.subr.bf16.mxu1 %v1420_v16 }
  0x64   : > { %1254 = vmatpush3.bf16.msra.mxu0 %v1413_v3  ;;  %1272 = vmatpush3.bf16.msra.mxu1 %v1420_v16  ;;  %v1433_v16 = vld [vmem:[#allocation5 + $0xb8] sm:$0xff]  }
  0x65   : > { %1255 = vmatprep.subr.bf16.mxu0 %v1414_v7  ;;  %1273 = vmatprep.subr.bf16.mxu1 %v1421_v17 }
  0x68   : > { %1256 = vmatpush3.bf16.msra.mxu0 %v1414_v7  ;;  %1274 = vmatpush3.bf16.msra.mxu1 %v1421_v17  ;;  %v1151_v17 = vld [vmem:[%s1949_s2 + $0x1] ss:$0 sm:$0xff] }
  0x69   : > { %1257 = vmatprep.subr.bf16.mxu0 %v1415_v8  ;;  %1275 = vmatprep.subr.bf16.mxu1 %v1422_v18 }
  0x6c   : > { %1258 = vmatpush3.bf16.msra.mxu0 %v1415_v8  ;;  %1276 = vmatpush3.bf16.msra.mxu1 %v1422_v18 }
  0x6d   : > { %1259 = vmatprep.subr.bf16.mxu0 %v1416_v9  ;;  %1277 = vmatprep.subr.bf16.mxu1 %v1423_v19 }
  0x70   : > { %1260 = vmatpush3.bf16.msra.mxu0 %v1416_v9  ;;  %1278 = vmatpush3.bf16.msra.mxu1 %v1423_v19 }
  0x71   : > { %1261 = vmatprep.subr.bf16.mxu0 %v1417_v10  ;;  %1279 = vmatprep.subr.bf16.mxu1 %v1424_v20 }
  0x74   : > { %1262 = vmatpush3.bf16.msra.mxu0 %v1417_v10  ;;  %1280 = vmatpush3.bf16.msra.mxu1 %v1424_v20 }
  0x75   : > { %1281 = vmatprep.subr.bf16.mxu1 %v1425_v21 }
  0x77   : > { %1264 = vmatmul.mubr.bf16.vlgmr.msra.gmra.mrb[0].mxu0 %v212_v13  ;;  %v1426_v13 = vld [vmem:[#allocation5 + $0x80] sm:$0xff]  }
  0x78   : > { %1282 = vmatpush3.bf16.msra.mxu1 %v1425_v21  ;;  %1287 = vmatprep.subr.bf16.mxu0 %v1426_v13 }
  0x79   : > { %1288 = vmatpush3.bf16.msra.mxu0 %v1426_v13  ;;  %v1439_v13 = vld [vmem:[#allocation5 + $0xe8] sm:$0xff]  }
 0x14a   : > { %v1265_v23 = vpop.f32.mrb[0].mxu0 }
 0x14b   : > { %v327_v24 = vadd.f32 %v1265_v23, %v1141_v22  ;;  %v318_v25 = vpop.f32.mrb[1].mxu0 }
 0x14c   : > { %v319_v26 = vadd.f32 %v1141_v22, %v318_v25  ;;  %v1266_v27 = vpop.f32.mrb[2].mxu0 }
 0x14d   : > { %v339_v28 = vmul.f32 %v327_v24, %v327_v24  ;;  %v330_v29 = vadd.f32 %v1266_v27, %v1141_v22  ;;  %v321_v30 = vpop.f32.mrb[3].mxu0  ;;  %v335_v58 = vmul.f32 0.5, %v327_v24 }
 0x14e   : > { %v337_v31 = vmul.f32 %v319_v26, %v319_v26  ;;  %v322_v32 = vadd.f32 %v1141_v22, %v321_v30  ;;  %v333_v55 = vmul.f32 0.5, %v319_v26 }
 0x14f   : > { %v343_v33 = vmul.f32 %v339_v28, %v327_v24  ;;  %v340_v34 = vmul.f32 %v330_v29, %v330_v29  ;;  %v336_v59 = vmul.f32 0.5, %v330_v29 }
 0x150   : > { %v341_v35 = vmul.f32 %v337_v31, %v319_v26  ;;  %v338_v36 = vmul.f32 %v322_v32, %v322_v32  ;;  %v334_v61 = vmul.f32 0.5, %v322_v32 }
 0x151   : > { %v347_v37 = vmul.f32 0.044715, %v343_v33  ;;  %v344_v38 = vmul.f32 %v340_v34, %v330_v29 }
 0x152   : > { %v345_v39 = vmul.f32 0.044715, %v341_v35  ;;  %v342_v40 = vmul.f32 %v338_v36, %v322_v32 }
 0x153   : > { %v351_v41 = vadd.f32 %v347_v37, %v327_v24  ;;  %v348_v42 = vmul.f32 0.044715, %v344_v38 }
 0x154   : > { %v349_v43 = vadd.f32 %v345_v39, %v319_v26  ;;  %v346_v44 = vmul.f32 0.044715, %v342_v40 }
 0x155   : > { %v355_v45 = vmul.f32 0.7978846, %v351_v41  ;;  %v352_v46 = vadd.f32 %v348_v42, %v330_v29 }
 0x156   : > { %v353_v47 = vmul.f32 0.7978846, %v349_v43  ;;  %v350_v48 = vadd.f32 %v346_v44, %v322_v32 }
 0x157   : > { %1450 = vtanh.f32 %v355_v45  ;;  %v356_v49 = vmul.f32 0.7978846, %v352_v46 }
 0x158   : > { %v354_v50 = vmul.f32 0.7978846, %v350_v48  ;;  %1452 = vtanh.f32 %v353_v47 }
 0x159   : > { %1454 = vtanh.f32 %v356_v49 }
 0x15a   : > { %1456 = vtanh.f32 %v354_v50 }
 0x161   : > { %v1451_v51 = vpop.eup %1450 }
 0x162   : > { %v1453_v52 = vpop.eup %1452  ;;  %v363_v53 = vadd.f32 1.0, %v1451_v51 }
 0x163   : > { %v1455_v54 = vpop.eup %1454  ;;  %v361_v56 = vadd.f32 1.0, %v1453_v52 }
 0x164   : > { %v1457_v57 = vpop.eup %1456  ;;  %v364_v60 = vadd.f32 1.0, %v1455_v54  ;;  %v367_v0 = vmul.f32 %v363_v53, %v335_v58 }
 0x165   : > { %v362_v62 = vadd.f32 1.0, %v1457_v57  ;;  %v365_v63 = vmul.f32 %v361_v56, %v333_v55 }
 0x166   : > { %v368_v1 = vmul.f32 %v364_v60, %v336_v59  ;;  %v1833_v8 = vadd.f32 %v367_v0, %v1813_v11  ;;  %v1430_v11 = vld [vmem:[#allocation5 + $0xa0] sm:$0xff]  }
 0x167   : > { %v366_v2 = vmul.f32 %v362_v62, %v334_v61  ;;  %v1827_v6 = vadd.f32 %v365_v63, %v1805_v4  ;;  %v1428_v4 = vld [vmem:[#allocation5 + $0x90] sm:$0xff]  }
 0x168   : > { %v1824_v3 = vadd.f32 %v368_v1, %v1816_v12  ;;  %v1427_v12 = vld [vmem:[#allocation5 + $0x88] sm:$0xff]  }
 0x169   : > { %v1830_v7 = vadd.f32 %v366_v2, %v1808_v5  ;;  %1289 = vmatprep.subr.bf16.mxu0 %v1427_v12  ;;  %v1429_v5 = vld [vmem:[#allocation5 + $0x98] sm:$0xff]  }
 0x16a   : > { %v374_v10 = vpack.c.bf16 %v1824_v3, %v1833_v8  ;;  %1290 = vmatpush3.bf16.msra.mxu0 %v1427_v12  ;;  %v1440_v12 = vld [vmem:[#allocation5 + $0xf0] sm:$0xff]  }
 0x16b   : > { %v373_v9 = vpack.c.bf16 %v1830_v7, %v1827_v6  ;;  %1291 = vmatprep.subr.bf16.mxu0 %v1428_v4 }
 0x16d   : > { %1283 = vmatprep.mubr.bf16.mxu1 %v373_v9 }
 0x16e   : > { %1284 = vmatmul.mubr.bf16.vlgmr.msra.gmra.mrb[0].mxu1 %v374_v10  ;;  %1292 = vmatpush3.bf16.msra.mxu0 %v1428_v4  ;;  %v1434_v10 = vld [vmem:[#allocation5 + $0xc0] sm:$0xff]   ;;  %v1441_v4 = vld [vmem:[#allocation5 + $0xf8] sm:$0xff]  }
 0x16f   : > { %1293 = vmatprep.subr.bf16.mxu0 %v1429_v5  ;;  %1307 = vmatprep.subr.bf16.mxu1 %v1434_v10 }
 0x170   : > { %1308 = vmatpush3.bf16.msra.mxu1 %v1434_v10  ;;  %v1447_v10 = vld [vmem:[#allocation5 + $0x128] sm:$0xff]  }
 0x172   : > { %1294 = vmatpush3.bf16.msra.mxu0 %v1429_v5  ;;  %v1161_v5 = vld [vmem:[%s1949_s2 + $0x2] ss:$0 sm:$0xff] }
 0x173   : > { %1295 = vmatprep.subr.bf16.mxu0 %v1430_v11 }
 0x176   : > { %1296 = vmatpush3.bf16.msra.mxu0 %v1430_v11 }
 0x177   : > { %1297 = vmatprep.subr.bf16.mxu0 %v1431_v14 }
 0x17a   : > { %1298 = vmatpush3.bf16.msra.mxu0 %v1431_v14 }
 0x17b   : > { %1299 = vmatprep.subr.bf16.mxu0 %v1432_v15 }
 0x17e   : > { %1300 = vmatpush3.bf16.msra.mxu0 %v1432_v15 }
 0x17f   : > { %1301 = vmatprep.subr.bf16.mxu0 %v1433_v16 }
 0x182   : > { %1302 = vmatpush3.bf16.msra.mxu0 %v1433_v16 }
 0x241   : > { %v1285_v18 = vpop.f32.mrb[0].mxu1 }
 0x242   : > { %v491_v19 = vadd.f32 %v1285_v18, %v1151_v17  ;;  %v482_v20 = vpop.f32.mrb[1].mxu1 }
 0x243   : > { %v483_v21 = vadd.f32 %v1151_v17, %v482_v20  ;;  %v1286_v22 = vpop.f32.mrb[2].mxu1 }
 0x244   : > { %v503_v23 = vmul.f32 %v491_v19, %v491_v19  ;;  %v494_v24 = vadd.f32 %v1286_v22, %v1151_v17  ;;  %v485_v25 = vpop.f32.mrb[3].mxu1  ;;  %v499_v53 = vmul.f32 0.5, %v491_v19 }
 0x245   : > { %v501_v26 = vmul.f32 %v483_v21, %v483_v21  ;;  %v486_v27 = vadd.f32 %v1151_v17, %v485_v25  ;;  %v497_v50 = vmul.f32 0.5, %v483_v21 }
 0x246   : > { %v507_v28 = vmul.f32 %v503_v23, %v491_v19  ;;  %v504_v29 = vmul.f32 %v494_v24, %v494_v24  ;;  %v500_v54 = vmul.f32 0.5, %v494_v24 }
 0x247   : > { %v505_v30 = vmul.f32 %v501_v26, %v483_v21  ;;  %v502_v31 = vmul.f32 %v486_v27, %v486_v27  ;;  %v498_v56 = vmul.f32 0.5, %v486_v27 }
 0x248   : > { %v511_v32 = vmul.f32 0.044715, %v507_v28  ;;  %v508_v33 = vmul.f32 %v504_v29, %v494_v24 }
 0x249   : > { %v509_v34 = vmul.f32 0.044715, %v505_v30  ;;  %v506_v35 = vmul.f32 %v502_v31, %v486_v27 }
 0x24a   : > { %v515_v36 = vadd.f32 %v511_v32, %v491_v19  ;;  %v512_v37 = vmul.f32 0.044715, %v508_v33 }
 0x24b   : > { %v513_v38 = vadd.f32 %v509_v34, %v483_v21  ;;  %v510_v39 = vmul.f32 0.044715, %v506_v35 }
 0x24c   : > { %v519_v40 = vmul.f32 0.7978846, %v515_v36  ;;  %v516_v41 = vadd.f32 %v512_v37, %v494_v24 }
 0x24d   : > { %v517_v42 = vmul.f32 0.7978846, %v513_v38  ;;  %v514_v43 = vadd.f32 %v510_v39, %v486_v27 }
 0x24e   : > { %1458 = vtanh.f32 %v519_v40  ;;  %v520_v44 = vmul.f32 0.7978846, %v516_v41 }
 0x24f   : > { %1460 = vtanh.f32 %v517_v42  ;;  %v518_v45 = vmul.f32 0.7978846, %v514_v43 }
 0x250   : > { %1462 = vtanh.f32 %v520_v44 }
 0x251   : > { %1464 = vtanh.f32 %v518_v45 }
 0x258   : > { %v1459_v46 = vpop.eup %1458 }
 0x259   : > { %v1461_v47 = vpop.eup %1460  ;;  %v527_v48 = vadd.f32 1.0, %v1459_v46 }
 0x25a   : > { %v1463_v49 = vpop.eup %1462  ;;  %v525_v51 = vadd.f32 1.0, %v1461_v47 }
 0x25b   : > { %v1465_v52 = vpop.eup %1464  ;;  %v528_v55 = vadd.f32 1.0, %v1463_v49  ;;  %v531_v59 = vmul.f32 %v527_v48, %v499_v53 }
 0x25c   : > { %v526_v57 = vadd.f32 1.0, %v1465_v52  ;;  %v529_v58 = vmul.f32 %v525_v51, %v497_v50 }
 0x25d   : > { %v532_v60 = vmul.f32 %v528_v55, %v500_v54  ;;  %v1852_v1 = vadd.f32 %v531_v59, %v1833_v8  ;;  %v1438_v8 = vld [vmem:[#allocation5 + $0xe0] sm:$0xff]  }
 0x25e   : > { %v530_v61 = vmul.f32 %v526_v57, %v498_v56  ;;  %v1846_v63 = vadd.f32 %v529_v58, %v1827_v6  ;;  %v1436_v6 = vld [vmem:[#allocation5 + $0xd0] sm:$0xff]  }
 0x25f   : > { %v1843_v62 = vadd.f32 %v532_v60, %v1824_v3  ;;  %v1435_v3 = vld [vmem:[#allocation5 + $0xc8] sm:$0xff]  }
 0x260   : > { %v1849_v0 = vadd.f32 %v530_v61, %v1830_v7  ;;  %1309 = vmatprep.subr.bf16.mxu1 %v1435_v3  ;;  %v1437_v7 = vld [vmem:[#allocation5 + $0xd8] sm:$0xff]  }
 0x261   : > { %v538_v9 = vpack.c.bf16 %v1843_v62, %v1852_v1  ;;  %1310 = vmatpush3.bf16.msra.mxu1 %v1435_v3  ;;  %v1448_v3 = vld [vmem:[#allocation5 + $0x130] sm:$0xff]  }
 0x262   : > { %v537_v2 = vpack.c.bf16 %v1849_v0, %v1846_v63  ;;  %1311 = vmatprep.subr.bf16.mxu1 %v1436_v6 }
 0x264   : > { %1303 = vmatprep.mubr.bf16.mxu0 %v537_v2 }
 0x265   : > { %1304 = vmatmul.mubr.bf16.vlgmr.msra.gmra.mrb[4].mxu0 %v538_v9  ;;  %1312 = vmatpush3.bf16.msra.mxu1 %v1436_v6  ;;  %v1442_v9 = vld [vmem:[#allocation5 + $0x100] sm:$0xff]   ;;  %v1449_v6 = vld [vmem:[#allocation5 + $0x138] sm:$0xff]  }
 0x266   : > { %1313 = vmatprep.subr.bf16.mxu1 %v1437_v7  ;;  %1327 = vmatprep.subr.bf16.mxu0 %v1442_v9 }
 0x267   : > { %1328 = vmatpush3.bf16.msra.mxu0 %v1442_v9 }
 0x269   : > { %1314 = vmatpush3.bf16.msra.mxu1 %v1437_v7  ;;  %v1171_v7 = vld [vmem:[%s1949_s2 + $0x3] ss:$0 sm:$0xff] }
 0x26a   : > { %1315 = vmatprep.subr.bf16.mxu1 %v1438_v8 }
 0x26d   : > { %1316 = vmatpush3.bf16.msra.mxu1 %v1438_v8 }
 0x26e   : > { %1317 = vmatprep.subr.bf16.mxu1 %v1439_v13 }
 0x271   : > { %1318 = vmatpush3.bf16.msra.mxu1 %v1439_v13 }
 0x272   : > { %1319 = vmatprep.subr.bf16.mxu1 %v1440_v12 }
 0x275   : > { %1320 = vmatpush3.bf16.msra.mxu1 %v1440_v12 }
 0x276   : > { %1321 = vmatprep.subr.bf16.mxu1 %v1441_v4 }
 0x279   : > { %1322 = vmatpush3.bf16.msra.mxu1 %v1441_v4 }
 0x338   : > { %v1305_v11 = vpop.f32.mrb[4].mxu0 }
 0x339   : > { %v655_v14 = vadd.f32 %v1305_v11, %v1161_v5  ;;  %v646_v15 = vpop.f32.mrb[5].mxu0 }
 0x33a   : > { %v647_v16 = vadd.f32 %v1161_v5, %v646_v15  ;;  %v1306_v17 = vpop.f32.mrb[6].mxu0 }
 0x33b   : > { %v667_v18 = vmul.f32 %v655_v14, %v655_v14  ;;  %v658_v19 = vadd.f32 %v1306_v17, %v1161_v5  ;;  %v649_v20 = vpop.f32.mrb[7].mxu0  ;;  %v663_v48 = vmul.f32 0.5, %v655_v14 }
 0x33c   : > { %v665_v21 = vmul.f32 %v647_v16, %v647_v16  ;;  %v650_v22 = vadd.f32 %v1161_v5, %v649_v20  ;;  %v661_v45 = vmul.f32 0.5, %v647_v16 }
 0x33d   : > { %v671_v23 = vmul.f32 %v667_v18, %v655_v14  ;;  %v668_v24 = vmul.f32 %v658_v19, %v658_v19  ;;  %v664_v49 = vmul.f32 0.5, %v658_v19 }
 0x33e   : > { %v669_v25 = vmul.f32 %v665_v21, %v647_v16  ;;  %v666_v26 = vmul.f32 %v650_v22, %v650_v22  ;;  %v662_v51 = vmul.f32 0.5, %v650_v22 }
 0x33f   : > { %v675_v27 = vmul.f32 0.044715, %v671_v23  ;;  %v672_v28 = vmul.f32 %v668_v24, %v658_v19 }
 0x340   : > { %v673_v29 = vmul.f32 0.044715, %v669_v25  ;;  %v670_v30 = vmul.f32 %v666_v26, %v650_v22 }
 0x341   : > { %v679_v31 = vadd.f32 %v675_v27, %v655_v14  ;;  %v676_v32 = vmul.f32 0.044715, %v672_v28 }
 0x342   : > { %v677_v33 = vadd.f32 %v673_v29, %v647_v16  ;;  %v674_v34 = vmul.f32 0.044715, %v670_v30 }
 0x343   : > { %v683_v35 = vmul.f32 0.7978846, %v679_v31  ;;  %v680_v36 = vadd.f32 %v676_v32, %v658_v19 }
 0x344   : > { %v681_v37 = vmul.f32 0.7978846, %v677_v33  ;;  %v678_v38 = vadd.f32 %v674_v34, %v650_v22 }
 0x345   : > { %1466 = vtanh.f32 %v683_v35  ;;  %v684_v39 = vmul.f32 0.7978846, %v680_v36 }
 0x346   : > { %1468 = vtanh.f32 %v681_v37  ;;  %v682_v40 = vmul.f32 0.7978846, %v678_v38 }
 0x347   : > { %1470 = vtanh.f32 %v684_v39 }
 0x348   : > { %1472 = vtanh.f32 %v682_v40 }
 0x34f   : > { %v1467_v41 = vpop.eup %1466 }
 0x350   : > { %v1469_v42 = vpop.eup %1468  ;;  %v691_v43 = vadd.f32 1.0, %v1467_v41 }
 0x351   : > { %v1471_v44 = vpop.eup %1470  ;;  %v689_v46 = vadd.f32 1.0, %v1469_v42 }
 0x352   : > { %v1473_v47 = vpop.eup %1472  ;;  %v692_v50 = vadd.f32 1.0, %v1471_v44  ;;  %v695_v54 = vmul.f32 %v691_v43, %v663_v48 }
 0x353   : > { %v690_v52 = vadd.f32 1.0, %v1473_v47  ;;  %v693_v53 = vmul.f32 %v689_v46, %v661_v45 }
 0x354   : > { %v696_v55 = vmul.f32 %v692_v50, %v664_v49  ;;  %v1871_v60 = vadd.f32 %v695_v54, %v1852_v1  ;;  %v1446_v1 = vld [vmem:[#allocation5 + $0x120] sm:$0xff]  }
 0x355   : > { %v694_v56 = vmul.f32 %v690_v52, %v662_v51  ;;  %v1865_v58 = vadd.f32 %v693_v53, %v1846_v63  ;;  %v1444_v63 = vld [vmem:[#allocation5 + $0x110] sm:$0xff]  }
 0x356   : > { %v1862_v57 = vadd.f32 %v696_v55, %v1843_v62  ;;  %v1443_v62 = vld [vmem:[#allocation5 + $0x108] sm:$0xff]  }
 0x357   : > { %v1868_v59 = vadd.f32 %v694_v56, %v1849_v0  ;;  %1329 = vmatprep.subr.bf16.mxu0 %v1443_v62  ;;  %v1445_v0 = vld [vmem:[#allocation5 + $0x118] sm:$0xff]  }
 0x358   : > { %v702_v2 = vpack.c.bf16 %v1862_v57, %v1871_v60  ;;  %1330 = vmatpush3.bf16.msra.mxu0 %v1443_v62 }
 0x359   : > { %v701_v61 = vpack.c.bf16 %v1868_v59, %v1865_v58  ;;  %1331 = vmatprep.subr.bf16.mxu0 %v1444_v63 }
 0x35b   : > { %1323 = vmatprep.mubr.bf16.mxu1 %v701_v61 }
 0x35c   : > { %1324 = vmatmul.mubr.bf16.vlgmr.msra.gmra.mrb[4].mxu1 %v702_v2  ;;  %1332 = vmatpush3.bf16.msra.mxu0 %v1444_v63  ;;  %v1181_v2 = vld [vmem:[%s1949_s2 + $0x4] ss:$0 sm:$0xff] }
 0x35d   : > { %1333 = vmatprep.subr.bf16.mxu0 %v1445_v0 }
 0x360   : > { %1334 = vmatpush3.bf16.msra.mxu0 %v1445_v0 }
 0x361   : > { %1335 = vmatprep.subr.bf16.mxu0 %v1446_v1 }
 0x364   : > { %1336 = vmatpush3.bf16.msra.mxu0 %v1446_v1 }
 0x365   : > { %1337 = vmatprep.subr.bf16.mxu0 %v1447_v10 }
 0x368   : > { %1338 = vmatpush3.bf16.msra.mxu0 %v1447_v10 }
 0x369   : > { %1339 = vmatprep.subr.bf16.mxu0 %v1448_v3 }
 0x36c   : > { %1340 = vmatpush3.bf16.msra.mxu0 %v1448_v3 }
 0x36d   : > { %1341 = vmatprep.subr.bf16.mxu0 %v1449_v6 }
 0x370   : > { %1342 = vmatpush3.bf16.msra.mxu0 %v1449_v6 }
 0x42f   : > { %v1325_v8 = vpop.f32.mrb[4].mxu1 }
 0x430   : > { %v819_v13 = vadd.f32 %v1325_v8, %v1171_v7  ;;  %v810_v12 = vpop.f32.mrb[5].mxu1 }
 0x431   : > { %v811_v4 = vadd.f32 %v1171_v7, %v810_v12  ;;  %v1326_v5 = vpop.f32.mrb[6].mxu1 }
 0x432   : > { %v831_v11 = vmul.f32 %v819_v13, %v819_v13  ;;  %v822_v14 = vadd.f32 %v1326_v5, %v1171_v7  ;;  %v813_v15 = vpop.f32.mrb[7].mxu1  ;;  %v827_v43 = vmul.f32 0.5, %v819_v13 }
 0x433   : > { %v829_v16 = vmul.f32 %v811_v4, %v811_v4  ;;  %v814_v17 = vadd.f32 %v1171_v7, %v813_v15  ;;  %v825_v40 = vmul.f32 0.5, %v811_v4 }
 0x434   : > { %v835_v18 = vmul.f32 %v831_v11, %v819_v13  ;;  %v832_v19 = vmul.f32 %v822_v14, %v822_v14  ;;  %v828_v44 = vmul.f32 0.5, %v822_v14 }
 0x435   : > { %v833_v20 = vmul.f32 %v829_v16, %v811_v4  ;;  %v830_v21 = vmul.f32 %v814_v17, %v814_v17  ;;  %v826_v46 = vmul.f32 0.5, %v814_v17 }
 0x436   : > { %v839_v22 = vmul.f32 0.044715, %v835_v18  ;;  %v836_v23 = vmul.f32 %v832_v19, %v822_v14 }
 0x437   : > { %v837_v24 = vmul.f32 0.044715, %v833_v20  ;;  %v834_v25 = vmul.f32 %v830_v21, %v814_v17 }
 0x438   : > { %v843_v26 = vadd.f32 %v839_v22, %v819_v13  ;;  %v840_v27 = vmul.f32 0.044715, %v836_v23 }
 0x439   : > { %v841_v28 = vadd.f32 %v837_v24, %v811_v4  ;;  %v838_v29 = vmul.f32 0.044715, %v834_v25 }
 0x43a   : > { %v847_v30 = vmul.f32 0.7978846, %v843_v26  ;;  %v844_v31 = vadd.f32 %v840_v27, %v822_v14 }
 0x43b   : > { %v845_v32 = vmul.f32 0.7978846, %v841_v28  ;;  %v842_v33 = vadd.f32 %v838_v29, %v814_v17 }
 0x43c   : > { %1474 = vtanh.f32 %v847_v30  ;;  %v848_v34 = vmul.f32 0.7978846, %v844_v31 }
 0x43d   : > { %1476 = vtanh.f32 %v845_v32  ;;  %v846_v35 = vmul.f32 0.7978846, %v842_v33 }
 0x43e   : > { %1478 = vtanh.f32 %v848_v34 }
 0x43f   : > { %1480 = vtanh.f32 %v846_v35 }
 0x446   : > { %v1475_v36 = vpop.eup %1474 }
 0x447   : > { %v1477_v37 = vpop.eup %1476  ;;  %v855_v38 = vadd.f32 1.0, %v1475_v36 }
 0x448   : > { %v1479_v39 = vpop.eup %1478  ;;  %v853_v41 = vadd.f32 1.0, %v1477_v37 }
 0x449   : > { %v1481_v42 = vpop.eup %1480  ;;  %v856_v45 = vadd.f32 1.0, %v1479_v39  ;;  %v859_v49 = vmul.f32 %v855_v38, %v827_v43 }
 0x44a   : > { %v854_v47 = vadd.f32 1.0, %v1481_v42  ;;  %v857_v48 = vmul.f32 %v853_v41, %v825_v40 }
 0x44b   : > { %v860_v50 = vmul.f32 %v856_v45, %v828_v44  ;;  %v863_v55 = vadd.f32 %v859_v49, %v1871_v60 }
 0x44c   : > { %v858_v51 = vmul.f32 %v854_v47, %v826_v46  ;;  %v861_v53 = vadd.f32 %v857_v48, %v1865_v58 }
 0x44d   : > { %v1881_v52 = vadd.f32 %v860_v50, %v1862_v57 }
 0x44e   : > { %v1885_v54 = vadd.f32 %v858_v51, %v1868_v59 }
 0x44f   : > { %v866_v61 = vpack.c.bf16 %v1881_v52, %v863_v55 }
 0x450   : > { %v865_v56 = vpack.c.bf16 %v1885_v54, %v861_v53 }
 0x452   : > { %1343 = vmatprep.mubr.bf16.mxu0 %v865_v56 }
 0x453   : > { %1344 = vmatmul.mubr.bf16.vlgmr.msra.gmra.mrb[8].mxu0 %v866_v61 }
 0x526   : > { %v1345_v9 = vpop.f32.mrb[8].mxu0 }
 0x527   : > { %v983_v57 = vadd.f32 %v1345_v9, %v1181_v2  ;;  %v974_v62 = vpop.f32.mrb[9].mxu0 }
 0x528   : > { %v975_v63 = vadd.f32 %v1181_v2, %v974_v62  ;;  %v1346_v58 = vpop.f32.mrb[10].mxu0 }
 0x529   : > { %v995_v0 = vmul.f32 %v983_v57, %v983_v57  ;;  %v986_v59 = vadd.f32 %v1346_v58, %v1181_v2  ;;  %v977_v1 = vpop.f32.mrb[11].mxu0  ;;  %v991_v25 = vmul.f32 0.5, %v983_v57 }
 0x52a   : > { %v993_v10 = vmul.f32 %v975_v63, %v975_v63  ;;  %v978_v60 = vadd.f32 %v1181_v2, %v977_v1  ;;  %v989_v28 = vmul.f32 0.5, %v975_v63 }
 0x52b   : > { %v999_v3 = vmul.f32 %v995_v0, %v983_v57  ;;  %v996_v6 = vmul.f32 %v986_v59, %v986_v59  ;;  %v992_v32 = vmul.f32 0.5, %v986_v59 }
 0x52c   : > { %v997_v7 = vmul.f32 %v993_v10, %v975_v63  ;;  %v994_v8 = vmul.f32 %v978_v60, %v978_v60  ;;  %v990_v35 = vmul.f32 0.5, %v978_v60 }
 0x52d   : > { %v1003_v13 = vmul.f32 0.044715, %v999_v3  ;;  %v1000_v12 = vmul.f32 %v996_v6, %v986_v59 }
 0x52e   : > { %v1001_v4 = vmul.f32 0.044715, %v997_v7  ;;  %v998_v5 = vmul.f32 %v994_v8, %v978_v60 }
 0x52f   : > { %v1007_v11 = vadd.f32 %v1003_v13, %v983_v57  ;;  %v1004_v14 = vmul.f32 0.044715, %v1000_v12 }
 0x530   : > { %v1005_v15 = vadd.f32 %v1001_v4, %v975_v63  ;;  %v1002_v16 = vmul.f32 0.044715, %v998_v5 }
 0x531   : > { %v1011_v17 = vmul.f32 0.7978846, %v1007_v11  ;;  %v1008_v18 = vadd.f32 %v1004_v14, %v986_v59 }
 0x532   : > { %v1009_v19 = vmul.f32 0.7978846, %v1005_v15  ;;  %v1006_v20 = vadd.f32 %v1002_v16, %v978_v60 }
 0x533   : > { %1482 = vtanh.f32 %v1011_v17  ;;  %v1012_v21 = vmul.f32 0.7978846, %v1008_v18 }
 0x534   : > { %1484 = vtanh.f32 %v1009_v19  ;;  %v1010_v22 = vmul.f32 0.7978846, %v1006_v20 }
 0x535   : > { %1486 = vtanh.f32 %v1012_v21 }
 0x536   : > { %1488 = vtanh.f32 %v1010_v22 }
 0x53d   : > { %v1483_v23 = vpop.eup %1482 }
 0x53e   : > { %v1485_v24 = vpop.eup %1484  ;;  %v1019_v26 = vadd.f32 1.0, %v1483_v23 }
 0x53f   : > { %v1487_v27 = vpop.eup %1486  ;;  %v1017_v29 = vadd.f32 1.0, %v1485_v24 }
 0x540   : > { %v1489_v30 = vpop.eup %1488  ;;  %v1023_v31 = vmul.f32 %v1019_v26, %v991_v25  ;;  %v1020_v33 = vadd.f32 1.0, %v1487_v27 }
 0x541   : > { %v1021_v34 = vmul.f32 %v1017_v29, %v989_v28  ;;  %v1018_v36 = vadd.f32 1.0, %v1489_v30 }
 0x542   : > { %v1027_v37 = vadd.f32 %v1023_v31, %v863_v55  ;;  %v1024_v38 = vmul.f32 %v1020_v33, %v992_v32 }
 0x543   : > { %v1025_v39 = vadd.f32 %v1021_v34, %v861_v53  ;;  %v1022_v40 = vmul.f32 %v1018_v36, %v990_v35 }
 0x544   : > { %1031 = vst [vmem:[%s203_s23 + $0x10] sm:$0xff] %v1027_v37  ;;  %v1028_v41 = vadd.f32 %v1024_v38, %v1881_v52 }
 0x545   : > { %1029 = vst [vmem:[%s203_s23] sm:$0xff] %v1025_v39  ;;  %v1026_v42 = vadd.f32 %v1022_v40, %v1885_v54 }
 0x546   : > { %1032 = vst [vmem:[%s203_s23 + $0x18] sm:$0xff] %v1028_v41 }
 0x547   : > { %1030 = vst [vmem:[%s203_s23 + $0x8] sm:$0xff] %v1026_v42 }
 0x548   : > { %1561 = shalt.err (!%p1558_p7)
}
 0x549   : > { %s1562_s25 = scalar_lea.hbm %s1900_s9, 512  ;;  %s1566_s10 = scalar_lea.hbm %s1950_s3, 1024 }
 0x54a   : > { %p1563_p9 = scmp.ne.s32.totalorder %s1900_s9, %s1562_s25  ;;  %p1567_p5 = scmp.lt.u32.totalorder %s1900_s9, %s1950_s3 }
 0x54b   : > { %p1568_p11 = scmp.lt.u32.totalorder %s1566_s10, %s1562_s25  ;;  %p1570_p4 = scmp.lt.u32.totalorder %s1562_s25, %s1900_s9 }
 0x54c   : > { %p1564_p2 = pnand %p1563_p9, %p1740_p12 }
 0x54d   : > { %p1569_p1 = por %p1568_p11, %p1567_p5 }
 0x54e   : > { %p1565_p0 = pneg %p1564_p2 }
 0x54f   : > { %p1571_p6 = por %p1570_p4, %p1569_p1 }
 0x551   : > { %p1572_p8 = pnand %p1571_p6, %p1565_p0 }
 0x553   : > { %1575 = shalt.err (!%p1572_p8)
}
 0x554   : > { %s1627_s28 = smov 128   ;;  %s1628_s29 = smov 8  }
 0x555   : > { %1353 = dma.vmem_to_hbm [thread:$0]  (%p1740_p12), %s1902_s30, 512, %s1900_s9, %s1034_s16, %s1627_s28, %s1627_s28, %s1628_s29  }
 0x556 PF: > { %s1062_s23 = sand.u32 1, %s1606_s12   ;;  %p1965_p10 = scmp.ne.s32.totalorder %s1955_s19, 0 }
 0x557   : > { %p1966_p13 = scmp.ge.s32.totalorder %s1618_s15, 2  ;;  %s1063_s22 = scalar_lea.sflag [#allocation4], %s1062_s23 }
 0x559   : > { %p1364_p3 = pnand %p1966_p13, %p1965_p10 }
 0x55b   : > { %1601 = dma.done.wait (!%p1364_p3), %s1063_s22, 512  }
 0x55c   : > { %1603 = vsyncadd (!%p1364_p3), %s1063_s22, 4294966784  ;;  %p17_p7 = scmp.ge.s32.totalorder %s1705_s24, 4   ;;  %s1967_s12 = smov %s1610_s13 }
 0x55d   : > { %s1968_s13 = smov %s1614_s14  ;;  %s1969_s14 = smov %s1736_s17 }
 0x55e   : > { %s1970_s15 = smov %s1705_s24  ;;  %19 = sbr.rel (!%p17_p7) target bundleno = 6 (0x6), region = 89 }
 0x565   :  { %1068 = vsyncpa [#allocation3], 1 }
 0x566   :  { %1070 = vsyncpa [#allocation3 + $0x1], 1 }
 0x567   :  { %1071 = vsyncpa [#allocation6], 1 }
 0x568   :  { %1072 = vsyncpa [#allocation4], 1 }
 0x569   :  { %1074 = vsyncpa [#allocation4 + $0x1], 1 }

// kernel: tpu_custom_call.1
= control target key start
LH: loop header
LB: loop body
LE: loop exit
PB: predicated region body
PF: predicated region fallthrough
CT: control target
= control target key end

     0   :  { %8 = vsyncpa [#allocation3], 0  ;;  %s1947_s0 = inlined_call_operand.hbm [shape: f32[64,128], index: 0, kind: input, shape index: {}]   ;;  %s1948_s1 = inlined_call_operand.hbm [shape: bf16[5,128,128], index: 1, kind: input, shape index: {}]   ;;  %s1949_s2 = inlined_call_operand.vmem [shape: f32[5,1,128], index: 2, kind: input, shape index: {}]   ;;  %s1950_s3 = inlined_call_operand.hbm [shape: f32[64,128], index: 3, kind: output, shape index: {}]  }
   0x1   :  { %10 = vsyncpa [#allocation3 + $0x1], 0 }
   0x2   :  { %11 = vsyncpa [#allocation6], 0 }
   0x3   :  { %12 = vsyncpa [#allocation4], 0 }
   0x4   :  { %14 = vsyncpa [#allocation4 + $0x1], 0  ;;  %s1649_s12 = smov 0   ;;  %s1651_s13 = smov 0  }
   0x5   :  { %s1653_s14 = smov 0   ;;  %s1655_s15 = smov 0  }
   0x6 LB: > { %s1670_s16 = sadd.s32 4294967295, %s1618_s15   ;;  %s1130_s17 = sadd.s32 4294967294, %s1618_s15   ;;  %s1618_s15 = sphi %s1655_s15, %s1970_s15   ;;  %s1614_s14 = sphi %s1653_s14, %s1969_s14   ;;  %s1610_s13 = sphi %s1651_s13, %s1968_s13   ;;  %s1606_s12 = sphi %s1649_s12, %s1967_s12  }
   0x7   : > { %p40_p0 = scmp.ne.s32.totalorder %s1610_s13, %s1606_s12  ;;  %p1951_p1 = scmp.eq.s32.totalorder %s1670_s16, 0 }
   0x8   : > { %p112_p3 = scmp.eq.s32.totalorder %s1130_s17, 1  ;;  %p1131_p5 = scmp.ge.s32.totalorder %s1618_s15, 1 }
   0x9   : > { %p1679_p4 = por %p1951_p1, %p40_p0  ;;  %p119_p7 = scmp.lt.s32.totalorder %s1618_s15, 3 }
   0xa   : > { %p1684_p6 = por %p112_p3, %p40_p0  ;;  %s1620_s21 = smov [#allocation5]  }
   0xb   : > { %s1954_s18 = scalar_select %p1679_p4, 1, 0 }
   0xc   : > { %s1955_s19 = scalar_select %p1684_p6, 1, 0 }
   0xd   : > { %p1689_p8 = pnand %p1131_p5, %p119_p7  ;;  %s131_s22 = sshll.u32 %s1620_s21, 4  ;;  %s1693_s22 = int_to_ptr.vmem [resolvable:$true] %s131_s22 }
   0xe   : > { %s1705_s24 = sadd.s32 1, %s1618_s15   ;;  %s27_s25 = sadd.s32 1, %s1614_s14 }
   0xf   : > { %s1956_s20 = scalar_select %p1689_p8, 1, 0 }
  0x10   : > { %p1355_p9 = pneg %p1689_p8  ;;  %s24_s26 = ssub.s32 %s1618_s15, %s1705_s24 }
  0x11   : > { %s1490_s29 = scalar_lea.hbm %s1948_s1, 5120 }
  0x12   : > { %p1700_p11 = pnand %p1355_p9, %p1951_p1  ;;  %p1491_p12 = scmp.ne.s32.totalorder %s1948_s1, %s1490_s29 }
  0x13   : > { %p1497_p5 = scmp.lt.u32.totalorder %s1490_s29, %s1948_s1 }
  0x14   : > { %p1492_p13 = pneg %p1700_p11 }
  0x16   : > { %p1493_p0 = pnand %p1492_p13, %p1491_p12 }
  0x18   : > { %p1494_p3 = pneg %p1493_p0 }
  0x1a   : > { %p1499_p7 = pnand %p1497_p5, %p1494_p3 }
  0x1c   : > { %1502 = shalt.err (!%p1499_p7)
}
  0x1d   : > { %s1503_s7 = scalar_lea.vmem %s1693_s22, 5120  ;;  %p1511_p2 = scmp.lt.s32.totalorder %s1693_s22, %s1693_s22 }
  0x1e   : > { %p1504_p9 = scmp.ne.s32.totalorder %s1693_s22, %s1503_s7  ;;  %p1512_p6 = scmp.lt.s32.totalorder %s1503_s7, %s1503_s7 }
  0x20   : > { %p1506_p10 = pnand %p1504_p9, %p1492_p13  ;;  %p1513_p4 = por %p1512_p6, %p1511_p2 }
  0x22   : > { %p1507_p1 = pneg %p1506_p10 }
  0x24   : > { %p1514_p8 = pnand %p1513_p4, %p1507_p1 }
  0x26   : > { %1517 = shalt.err (!%p1514_p8)
}
  0x27   : > { %s1621_s8 = smov 64   ;;  %s1622_s9 = smov 4  }
  0x28   : > { %1358 = dma.hbm_to_vmem [thread:$0]  (!%p1700_p11), %s1948_s1, 5120, %s1693_s22, [#allocation6], %s1621_s8, %s1621_s8, %s1622_s9  }
  0x29   : > { %p25_p2 = scmp.eq.s32.totalorder %s24_s26, 0  ;;  %p34_p1 = scmp.ne.s32.totalorder %s1614_s14, %s1610_s13 }
  0x2a   : > { %p35_p4 = scmp.eq.s32.totalorder %s1618_s15, 0  ;;  %p1368_p6 = scmp.lt.s32.totalorder %s1618_s15, 2 }
  0x2b   : > { %s1736_s17 = scalar_select %p25_p2, %s1614_s14, %s27_s25  }
  0x2c   : > { %p36_p8 = por %p35_p4, %p34_p1  ;;  %p1958_p10 = scmp.eq.s32.totalorder %s1670_s16, 1 }
  0x2d   : > { %s148_s27 = sand.u32 1, %s1614_s14   ;;  %s1195_s28 = sshll.u32 %s1618_s15, 9 }
  0x2e   : > { %p1740_p12 = por %p1958_p10, %p34_p1  ;;  %s1134_s29 = sshll.u32 %s148_s27, 5 }
  0x2f   : > { %s1749_s4 = scalar_lea.hbm %s1947_s0, %s1195_s28  ;;  %s152_s22 = scalar_lea.vmem [#allocation2], %s1134_s29 }
  0x30   : > { %s159_s25 = sshll.u32 %s152_s22, 4  ;;  %p1751_p11 = pnand %p1368_p6, %p36_p8  ;;  %s1755_s25 = int_to_ptr.vmem [resolvable:$true] %s159_s25 }
  0x31   : > { %s1757_s5 = scalar_lea.sflag [#allocation3], %s148_s27  ;;  %s1518_s6 = scalar_lea.hbm %s1749_s4, 512 }
  0x32   : > { %p1519_p13 = scmp.ne.s32.totalorder %s1749_s4, %s1518_s6  ;;  %p1520_p0 = pneg %p1751_p11 }
  0x33   : > { %s1523_s9 = scalar_lea.hbm %s1947_s0, 1024  ;;  %p1524_p7 = scmp.lt.u32.totalorder %s1749_s4, %s1947_s0 }
  0x34   : > { %p1521_p3 = pnand %p1520_p0, %p1519_p13  ;;  %p1525_p9 = scmp.lt.u32.totalorder %s1523_s9, %s1518_s6 }
  0x35   : > { %p1527_p1 = scmp.lt.u32.totalorder %s1518_s6, %s1749_s4 }
  0x36   : > { %p1522_p5 = pneg %p1521_p3  ;;  %p1526_p2 = por %p1525_p9, %p1524_p7 }
  0x38   : > { %p1528_p4 = por %p1527_p1, %p1526_p2 }
  0x3a   : > { %p1529_p6 = pnand %p1528_p4, %p1522_p5 }
  0x3c   : > { %1532 = shalt.err (!%p1529_p6)
}
  0x3d   : > { %s1533_s27 = scalar_lea.vmem %s1755_s25, 512  ;;  %s1623_s28 = smov [#allocation2]  }
  0x3e   : > { %p1534_p8 = scmp.ne.s32.totalorder %s1755_s25, %s1533_s27  ;;  %s1538_s29 = sshll.u32 %s1623_s28, 4  ;;  %s1539_s29 = int_to_ptr.vmem [resolvable:$false] %s1538_s29 }
  0x3f   : > { %s1540_s23 = scalar_lea.vmem %s1539_s29, 1024  ;;  %p1541_p3 = scmp.lt.s32.totalorder %s1755_s25, %s1539_s29 }
  0x40   : > { %p1536_p10 = pnand %p1534_p8, %p1520_p0  ;;  %p1542_p7 = scmp.lt.s32.totalorder %s1540_s23, %s1533_s27 }
  0x42   : > { %p1537_p13 = pneg %p1536_p10  ;;  %p1543_p9 = por %p1542_p7, %p1541_p3 }
  0x44   : > { %p1544_p2 = pnand %p1543_p9, %p1537_p13 }
  0x46   : > { %1547 = shalt.err (!%p1544_p2)
}
  0x47   : > { %s1624_s30 = smov 128   ;;  %s1625_s22 = smov 8  }
  0x48   : > { %1362 = dma.hbm_to_vmem [thread:$0]  (!%p1751_p11), %s1749_s4, 512, %s1755_s25, %s1757_s5, %s1624_s30, %s1624_s30, %s1625_s22  }
  0x49   : > { %p1961_p0 = scmp.ne.s32.totalorder %s1956_s20, 0 }
  0x4a   : > { %s1788_s6 = sand.u32 (!%p1961_p0), 1, %s1610_s13   ;;  %p1962_p5 = scmp.ne.s32.totalorder (!%p1961_p0), %s1954_s18, 0 }
  0x4b   : > { %171 = sbr.rel (%p1961_p0) target bundleno = 1366 (0x556), region = 32  ;;  %s1138_s7 = sshll.u32 (!%p1961_p0), %s1788_s6, 5 }
  0x4c   : > { %s174_s8 = scalar_lea.sflag (!%p1961_p0), [#allocation3], %s1788_s6  ;;  %s1794_s9 = scalar_lea.vmem (!%p1961_p0), [#allocation2], %s1138_s7 }
  0x52   : > { %1593 = dma.done.wait (%p1962_p5), %s174_s8, 512  }
  0x53   : > { %1595 = vsyncadd (%p1962_p5), %s174_s8, 4294966784  ;;  %p1963_p11 = scmp.eq.s32.totalorder %s1670_s16, 0 }
  0x55   : > { %1597 = dma.done.wait (%p1963_p11), [#allocation6], 5120   ;;  %p1964_p1 = pmov %p1963_p11 }
  0x56   : > { %v1410_v0 = vld [vmem:[#allocation5] sm:$0xff]   ;;  %v1411_v1 = vld [vmem:[#allocation5 + $0x8] sm:$0xff]   ;;  %v1412_v2 = vld [vmem:[#allocation5 + $0x10] sm:$0xff]   ;;  %s1196_s29 = sshll.u32 %s1670_s16, 9  ;;  %s203_s23 = scalar_lea.vmem [#allocation7], %s1138_s7 }
  0x57   : > { %1599 = vsyncadd (%p1964_p1), [#allocation6], 4294962176  ;;  %1247 = vmatprep.subr.bf16.mxu0 %v1410_v0  ;;  %v1413_v3 = vld [vmem:[#allocation5 + $0x18] sm:$0xff]   ;;  %v1805_v4 = vld [vmem:[%s1794_s9] sm:$0xff]  ;;  %s1047_s30 = sshll.u32 %s203_s23, 4  ;;  %s1034_s16 = scalar_lea.sflag [#allocation4], %s1788_s6  ;;  %s1902_s30 = int_to_ptr.vmem [resolvable:$true] %s1047_s30 }
  0x58   : > { %1248 = vmatpush3.bf16.msra.mxu0 %v1410_v0  ;;  %v1808_v5 = vld [vmem:[%s1794_s9 + $0x8] sm:$0xff]  ;;  %v1414_v7 = vld [vmem:[#allocation5 + $0x20] sm:$0xff]   ;;  %v1416_v9 = vld [vmem:[#allocation5 + $0x30] sm:$0xff]   ;;  %s1548_s7 = scalar_lea.vmem %s1902_s30, 512  ;;  %s1626_s18 = smov [#allocation7]  }
  0x59   : > { %1249 = vmatprep.subr.bf16.mxu0 %v1411_v1  ;;  %v211_v6 = vpack.c.bf16 %v1808_v5, %v1805_v4  ;;  %v1415_v8 = vld [vmem:[#allocation5 + $0x28] sm:$0xff]   ;;  %v1417_v10 = vld [vmem:[#allocation5 + $0x38] sm:$0xff]   ;;  %v1813_v11 = vld [vmem:[%s1794_s9 + $0x10] sm:$0xff]  ;;  %p1549_p4 = scmp.ne.s32.totalorder %s1902_s30, %s1548_s7  ;;  %s1552_s20 = sshll.u32 %s1626_s18, 4  ;;  %s1553_s20 = int_to_ptr.vmem [resolvable:$false] %s1552_s20 }
  0x5a   : > { %v1816_v12 = vld [vmem:[%s1794_s9 + $0x18] sm:$0xff]  ;;  %v1418_v14 = vld [vmem:[#allocation5 + $0x40] sm:$0xff]   ;;  %v1419_v15 = vld [vmem:[#allocation5 + $0x48] sm:$0xff]   ;;  %s1900_s9 = scalar_lea.hbm %s1950_s3, %s1196_s29  ;;  %s1554_s4 = scalar_lea.vmem %s1553_s20, 1024 }
  0x5b   : > { %1263 = vmatprep.mubr.bf16.mxu0 %v211_v6  ;;  %v212_v13 = vpack.c.bf16 %v1816_v12, %v1813_v11  ;;  %1267 = vmatprep.subr.bf16.mxu1 %v1418_v14  ;;  %v1420_v16 = vld [vmem:[#allocation5 + $0x50] sm:$0xff]   ;;  %v1421_v17 = vld [vmem:[#allocation5 + $0x58] sm:$0xff]   ;;  %v1422_v18 = vld [vmem:[#allocation5 + $0x60] sm:$0xff]   ;;  %p1550_p6 = pnand %p1549_p4, %p1740_p12  ;;  %p1555_p10 = scmp.lt.s32.totalorder %s1902_s30, %s1553_s20 }
  0x5c   : > { %1250 = vmatpush3.bf16.msra.mxu0 %v1411_v1  ;;  %1268 = vmatpush3.bf16.msra.mxu1 %v1418_v14  ;;  %v1423_v19 = vld [vmem:[#allocation5 + $0x68] sm:$0xff]   ;;  %v1424_v20 = vld [vmem:[#allocation5 + $0x70] sm:$0xff]   ;;  %v1425_v21 = vld [vmem:[#allocation5 + $0x78] sm:$0xff]   ;;  %p1556_p13 = scmp.lt.s32.totalorder %s1554_s4, %s1548_s7 }
  0x5d   : > { %1251 = vmatprep.subr.bf16.mxu0 %v1412_v2  ;;  %1269 = vmatprep.subr.bf16.mxu1 %v1419_v15  ;;  %v1141_v22 = vld [vmem:[%s1949_s2] ss:$0 sm:$0xff]  ;;  %v1431_v14 = vld [vmem:[#allocation5 + $0xa8] sm:$0xff]   ;;  %p1551_p8 = pneg %p1550_p6 }
  0x5e   : > { %p1557_p3 = por %p1556_p13, %p1555_p10 }
  0x60   : > { %1252 = vmatpush3.bf16.msra.mxu0 %v1412_v2  ;;  %1270 = vmatpush3.bf16.msra.mxu1 %v1419_v15  ;;  %v1432_v15 = vld [vmem:[#allocation5 + $0xb0] sm:$0xff]   ;;  %p1558_p7 = pnand %p1557_p3, %p1551_p8 }
  0x61   : > { %1253 = vmatprep.subr.bf16.mxu0 %v1413_v3  ;;  %1271 = vmatprep.subr.bf16.mxu1 %v1420_v16 }
  0x64   : > { %1254 = vmatpush3.bf16.msra.mxu0 %v1413_v3  ;;  %1272 = vmatpush3.bf16.msra.mxu1 %v1420_v16  ;;  %v1433_v16 = vld [vmem:[#allocation5 + $0xb8] sm:$0xff]  }
  0x65   : > { %1255 = vmatprep.subr.bf16.mxu0 %v1414_v7  ;;  %1273 = vmatprep.subr.bf16.mxu1 %v1421_v17 }
  0x68   : > { %1256 = vmatpush3.bf16.msra.mxu0 %v1414_v7  ;;  %1274 = vmatpush3.bf16.msra.mxu1 %v1421_v17  ;;  %v1151_v17 = vld [vmem:[%s1949_s2 + $0x1] ss:$0 sm:$0xff] }
  0x69   : > { %1257 = vmatprep.subr.bf16.mxu0 %v1415_v8  ;;  %1275 = vmatprep.subr.bf16.mxu1 %v1422_v18 }
  0x6c   : > { %1258 = vmatpush3.bf16.msra.mxu0 %v1415_v8  ;;  %1276 = vmatpush3.bf16.msra.mxu1 %v1422_v18 }
  0x6d   : > { %1259 = vmatprep.subr.bf16.mxu0 %v1416_v9  ;;  %1277 = vmatprep.subr.bf16.mxu1 %v1423_v19 }
  0x70   : > { %1260 = vmatpush3.bf16.msra.mxu0 %v1416_v9  ;;  %1278 = vmatpush3.bf16.msra.mxu1 %v1423_v19 }
  0x71   : > { %1261 = vmatprep.subr.bf16.mxu0 %v1417_v10  ;;  %1279 = vmatprep.subr.bf16.mxu1 %v1424_v20 }
  0x74   : > { %1262 = vmatpush3.bf16.msra.mxu0 %v1417_v10  ;;  %1280 = vmatpush3.bf16.msra.mxu1 %v1424_v20 }
  0x75   : > { %1281 = vmatprep.subr.bf16.mxu1 %v1425_v21 }
  0x77   : > { %1264 = vmatmul.mubr.bf16.vlgmr.msra.gmra.mrb[0].mxu0 %v212_v13  ;;  %v1426_v13 = vld [vmem:[#allocation5 + $0x80] sm:$0xff]  }
  0x78   : > { %1282 = vmatpush3.bf16.msra.mxu1 %v1425_v21  ;;  %1287 = vmatprep.subr.bf16.mxu0 %v1426_v13 }
  0x79   : > { %1288 = vmatpush3.bf16.msra.mxu0 %v1426_v13  ;;  %v1439_v13 = vld [vmem:[#allocation5 + $0xe8] sm:$0xff]  }
 0x14a   : > { %v1265_v23 = vpop.f32.mrb[0].mxu0 }
 0x14b   : > { %v327_v24 = vadd.f32 %v1265_v23, %v1141_v22  ;;  %v318_v25 = vpop.f32.mrb[1].mxu0 }
 0x14c   : > { %v319_v26 = vadd.f32 %v1141_v22, %v318_v25  ;;  %v1266_v27 = vpop.f32.mrb[2].mxu0 }
 0x14d   : > { %v339_v28 = vmul.f32 %v327_v24, %v327_v24  ;;  %v330_v29 = vadd.f32 %v1266_v27, %v1141_v22  ;;  %v321_v30 = vpop.f32.mrb[3].mxu0  ;;  %v335_v58 = vmul.f32 0.5, %v327_v24 }
 0x14e   : > { %v337_v31 = vmul.f32 %v319_v26, %v319_v26  ;;  %v322_v32 = vadd.f32 %v1141_v22, %v321_v30  ;;  %v333_v55 = vmul.f32 0.5, %v319_v26 }
 0x14f   : > { %v343_v33 = vmul.f32 %v339_v28, %v327_v24  ;;  %v340_v34 = vmul.f32 %v330_v29, %v330_v29  ;;  %v336_v59 = vmul.f32 0.5, %v330_v29 }
 0x150   : > { %v341_v35 = vmul.f32 %v337_v31, %v319_v26  ;;  %v338_v36 = vmul.f32 %v322_v32, %v322_v32  ;;  %v334_v61 = vmul.f32 0.5, %v322_v32 }
 0x151   : > { %v347_v37 = vmul.f32 0.044715, %v343_v33  ;;  %v344_v38 = vmul.f32 %v340_v34, %v330_v29 }
 0x152   : > { %v345_v39 = vmul.f32 0.044715, %v341_v35  ;;  %v342_v40 = vmul.f32 %v338_v36, %v322_v32 }
 0x153   : > { %v351_v41 = vadd.f32 %v347_v37, %v327_v24  ;;  %v348_v42 = vmul.f32 0.044715, %v344_v38 }
 0x154   : > { %v349_v43 = vadd.f32 %v345_v39, %v319_v26  ;;  %v346_v44 = vmul.f32 0.044715, %v342_v40 }
 0x155   : > { %v355_v45 = vmul.f32 0.7978846, %v351_v41  ;;  %v352_v46 = vadd.f32 %v348_v42, %v330_v29 }
 0x156   : > { %v353_v47 = vmul.f32 0.7978846, %v349_v43  ;;  %v350_v48 = vadd.f32 %v346_v44, %v322_v32 }
 0x157   : > { %1450 = vtanh.f32 %v355_v45  ;;  %v356_v49 = vmul.f32 0.7978846, %v352_v46 }
 0x158   : > { %v354_v50 = vmul.f32 0.7978846, %v350_v48  ;;  %1452 = vtanh.f32 %v353_v47 }
 0x159   : > { %1454 = vtanh.f32 %v356_v49 }
 0x15a   : > { %1456 = vtanh.f32 %v354_v50 }
 0x161   : > { %v1451_v51 = vpop.eup %1450 }
 0x162   : > { %v1453_v52 = vpop.eup %1452  ;;  %v363_v53 = vadd.f32 1.0, %v1451_v51 }
 0x163   : > { %v1455_v54 = vpop.eup %1454  ;;  %v361_v56 = vadd.f32 1.0, %v1453_v52 }
 0x164   : > { %v1457_v57 = vpop.eup %1456  ;;  %v364_v60 = vadd.f32 1.0, %v1455_v54  ;;  %v367_v0 = vmul.f32 %v363_v53, %v335_v58 }
 0x165   : > { %v362_v62 = vadd.f32 1.0, %v1457_v57  ;;  %v365_v63 = vmul.f32 %v361_v56, %v333_v55 }
 0x166   : > { %v368_v1 = vmul.f32 %v364_v60, %v336_v59  ;;  %v1833_v8 = vadd.f32 %v367_v0, %v1813_v11  ;;  %v1430_v11 = vld [vmem:[#allocation5 + $0xa0] sm:$0xff]  }
 0x167   : > { %v366_v2 = vmul.f32 %v362_v62, %v334_v61  ;;  %v1827_v6 = vadd.f32 %v365_v63, %v1805_v4  ;;  %v1428_v4 = vld [vmem:[#allocation5 + $0x90] sm:$0xff]  }
 0x168   : > { %v1824_v3 = vadd.f32 %v368_v1, %v1816_v12  ;;  %v1427_v12 = vld [vmem:[#allocation5 + $0x88] sm:$0xff]  }
 0x169   : > { %v1830_v7 = vadd.f32 %v366_v2, %v1808_v5  ;;  %1289 = vmatprep.subr.bf16.mxu0 %v1427_v12  ;;  %v1429_v5 = vld [vmem:[#allocation5 + $0x98] sm:$0xff]  }
 0x16a   : > { %v374_v10 = vpack.c.bf16 %v1824_v3, %v1833_v8  ;;  %1290 = vmatpush3.bf16.msra.mxu0 %v1427_v12  ;;  %v1440_v12 = vld [vmem:[#allocation5 + $0xf0] sm:$0xff]  }
 0x16b   : > { %v373_v9 = vpack.c.bf16 %v1830_v7, %v1827_v6  ;;  %1291 = vmatprep.subr.bf16.mxu0 %v1428_v4 }
 0x16d   : > { %1283 = vmatprep.mubr.bf16.mxu1 %v373_v9 }
 0x16e   : > { %1284 = vmatmul.mubr.bf16.vlgmr.msra.gmra.mrb[0].mxu1 %v374_v10  ;;  %1292 = vmatpush3.bf16.msra.mxu0 %v1428_v4  ;;  %v1434_v10 = vld [vmem:[#allocation5 + $0xc0] sm:$0xff]   ;;  %v1441_v4 = vld [vmem:[#allocation5 + $0xf8] sm:$0xff]  }
 0x16f   : > { %1293 = vmatprep.subr.bf16.mxu0 %v1429_v5  ;;  %1307 = vmatprep.subr.bf16.mxu1 %v1434_v10 }
 0x170   : > { %1308 = vmatpush3.bf16.msra.mxu1 %v1434_v10  ;;  %v1447_v10 = vld [vmem:[#allocation5 + $0x128] sm:$0xff]  }
 0x172   : > { %1294 = vmatpush3.bf16.msra.mxu0 %v1429_v5  ;;  %v1161_v5 = vld [vmem:[%s1949_s2 + $0x2] ss:$0 sm:$0xff] }
 0x173   : > { %1295 = vmatprep.subr.bf16.mxu0 %v1430_v11 }
 0x176   : > { %1296 = vmatpush3.bf16.msra.mxu0 %v1430_v11 }
 0x177   : > { %1297 = vmatprep.subr.bf16.mxu0 %v1431_v14 }
 0x17a   : > { %1298 = vmatpush3.bf16.msra.mxu0 %v1431_v14 }
 0x17b   : > { %1299 = vmatprep.subr.bf16.mxu0 %v1432_v15 }
 0x17e   : > { %1300 = vmatpush3.bf16.msra.mxu0 %v1432_v15 }
 0x17f   : > { %1301 = vmatprep.subr.bf16.mxu0 %v1433_v16 }
 0x182   : > { %1302 = vmatpush3.bf16.msra.mxu0 %v1433_v16 }
 0x241   : > { %v1285_v18 = vpop.f32.mrb[0].mxu1 }
 0x242   : > { %v491_v19 = vadd.f32 %v1285_v18, %v1151_v17  ;;  %v482_v20 = vpop.f32.mrb[1].mxu1 }
 0x243   : > { %v483_v21 = vadd.f32 %v1151_v17, %v482_v20  ;;  %v1286_v22 = vpop.f32.mrb[2].mxu1 }
 0x244   : > { %v503_v23 = vmul.f32 %v491_v19, %v491_v19  ;;  %v494_v24 = vadd.f32 %v1286_v22, %v1151_v17  ;;  %v485_v25 = vpop.f32.mrb[3].mxu1  ;;  %v499_v53 = vmul.f32 0.5, %v491_v19 }
 0x245   : > { %v501_v26 = vmul.f32 %v483_v21, %v483_v21  ;;  %v486_v27 = vadd.f32 %v1151_v17, %v485_v25  ;;  %v497_v50 = vmul.f32 0.5, %v483_v21 }
 0x246   : > { %v507_v28 = vmul.f32 %v503_v23, %v491_v19  ;;  %v504_v29 = vmul.f32 %v494_v24, %v494_v24  ;;  %v500_v54 = vmul.f32 0.5, %v494_v24 }
 0x247   : > { %v505_v30 = vmul.f32 %v501_v26, %v483_v21  ;;  %v502_v31 = vmul.f32 %v486_v27, %v486_v27  ;;  %v498_v56 = vmul.f32 0.5, %v486_v27 }
 0x248   : > { %v511_v32 = vmul.f32 0.044715, %v507_v28  ;;  %v508_v33 = vmul.f32 %v504_v29, %v494_v24 }
 0x249   : > { %v509_v34 = vmul.f32 0.044715, %v505_v30  ;;  %v506_v35 = vmul.f32 %v502_v31, %v486_v27 }
 0x24a   : > { %v515_v36 = vadd.f32 %v511_v32, %v491_v19  ;;  %v512_v37 = vmul.f32 0.044715, %v508_v33 }
 0x24b   : > { %v513_v38 = vadd.f32 %v509_v34, %v483_v21  ;;  %v510_v39 = vmul.f32 0.044715, %v506_v35 }
 0x24c   : > { %v519_v40 = vmul.f32 0.7978846, %v515_v36  ;;  %v516_v41 = vadd.f32 %v512_v37, %v494_v24 }
 0x24d   : > { %v517_v42 = vmul.f32 0.7978846, %v513_v38  ;;  %v514_v43 = vadd.f32 %v510_v39, %v486_v27 }
 0x24e   : > { %1458 = vtanh.f32 %v519_v40  ;;  %v520_v44 = vmul.f32 0.7978846, %v516_v41 }
 0x24f   : > { %1460 = vtanh.f32 %v517_v42  ;;  %v518_v45 = vmul.f32 0.7978846, %v514_v43 }
 0x250   : > { %1462 = vtanh.f32 %v520_v44 }
 0x251   : > { %1464 = vtanh.f32 %v518_v45 }
 0x258   : > { %v1459_v46 = vpop.eup %1458 }
 0x259   : > { %v1461_v47 = vpop.eup %1460  ;;  %v527_v48 = vadd.f32 1.0, %v1459_v46 }
 0x25a   : > { %v1463_v49 = vpop.eup %1462  ;;  %v525_v51 = vadd.f32 1.0, %v1461_v47 }
 0x25b   : > { %v1465_v52 = vpop.eup %1464  ;;  %v528_v55 = vadd.f32 1.0, %v1463_v49  ;;  %v531_v59 = vmul.f32 %v527_v48, %v499_v53 }
 0x25c   : > { %v526_v57 = vadd.f32 1.0, %v1465_v52  ;;  %v529_v58 = vmul.f32 %v525_v51, %v497_v50 }
 0x25d   : > { %v532_v60 = vmul.f32 %v528_v55, %v500_v54  ;;  %v1852_v1 = vadd.f32 %v531_v59, %v1833_v8  ;;  %v1438_v8 = vld [vmem:[#allocation5 + $0xe0] sm:$0xff]  }
 0x25e   : > { %v530_v61 = vmul.f32 %v526_v57, %v498_v56  ;;  %v1846_v63 = vadd.f32 %v529_v58, %v1827_v6  ;;  %v1436_v6 = vld [vmem:[#allocation5 + $0xd0] sm:$0xff]  }
 0x25f   : > { %v1843_v62 = vadd.f32 %v532_v60, %v1824_v3  ;;  %v1435_v3 = vld [vmem:[#allocation5 + $0xc8] sm:$0xff]  }
 0x260   : > { %v1849_v0 = vadd.f32 %v530_v61, %v1830_v7  ;;  %1309 = vmatprep.subr.bf16.mxu1 %v1435_v3  ;;  %v1437_v7 = vld [vmem:[#allocation5 + $0xd8] sm:$0xff]  }
 0x261   : > { %v538_v9 = vpack.c.bf16 %v1843_v62, %v1852_v1  ;;  %1310 = vmatpush3.bf16.msra.mxu1 %v1435_v3  ;;  %v1448_v3 = vld [vmem:[#allocation5 + $0x130] sm:$0xff]  }
 0x262   : > { %v537_v2 = vpack.c.bf16 %v1849_v0, %v1846_v63  ;;  %1311 = vmatprep.subr.bf16.mxu1 %v1436_v6 }
 0x264   : > { %1303 = vmatprep.mubr.bf16.mxu0 %v537_v2 }
 0x265   : > { %1304 = vmatmul.mubr.bf16.vlgmr.msra.gmra.mrb[4].mxu0 %v538_v9  ;;  %1312 = vmatpush3.bf16.msra.mxu1 %v1436_v6  ;;  %v1442_v9 = vld [vmem:[#allocation5 + $0x100] sm:$0xff]   ;;  %v1449_v6 = vld [vmem:[#allocation5 + $0x138] sm:$0xff]  }
 0x266   : > { %1313 = vmatprep.subr.bf16.mxu1 %v1437_v7  ;;  %1327 = vmatprep.subr.bf16.mxu0 %v1442_v9 }
 0x267   : > { %1328 = vmatpush3.bf16.msra.mxu0 %v1442_v9 }
 0x269   : > { %1314 = vmatpush3.bf16.msra.mxu1 %v1437_v7  ;;  %v1171_v7 = vld [vmem:[%s1949_s2 + $0x3] ss:$0 sm:$0xff] }
 0x26a   : > { %1315 = vmatprep.subr.bf16.mxu1 %v1438_v8 }
 0x26d   : > { %1316 = vmatpush3.bf16.msra.mxu1 %v1438_v8 }
 0x26e   : > { %1317 = vmatprep.subr.bf16.mxu1 %v1439_v13 }
 0x271   : > { %1318 = vmatpush3.bf16.msra.mxu1 %v1439_v13 }
 0x272   : > { %1319 = vmatprep.subr.bf16.mxu1 %v1440_v12 }
 0x275   : > { %1320 = vmatpush3.bf16.msra.mxu1 %v1440_v12 }
 0x276   : > { %1321 = vmatprep.subr.bf16.mxu1 %v1441_v4 }
 0x279   : > { %1322 = vmatpush3.bf16.msra.mxu1 %v1441_v4 }
 0x338   : > { %v1305_v11 = vpop.f32.mrb[4].mxu0 }
 0x339   : > { %v655_v14 = vadd.f32 %v1305_v11, %v1161_v5  ;;  %v646_v15 = vpop.f32.mrb[5].mxu0 }
 0x33a   : > { %v647_v16 = vadd.f32 %v1161_v5, %v646_v15  ;;  %v1306_v17 = vpop.f32.mrb[6].mxu0 }
 0x33b   : > { %v667_v18 = vmul.f32 %v655_v14, %v655_v14  ;;  %v658_v19 = vadd.f32 %v1306_v17, %v1161_v5  ;;  %v649_v20 = vpop.f32.mrb[7].mxu0  ;;  %v663_v48 = vmul.f32 0.5, %v655_v14 }
 0x33c   : > { %v665_v21 = vmul.f32 %v647_v16, %v647_v16  ;;  %v650_v22 = vadd.f32 %v1161_v5, %v649_v20  ;;  %v661_v45 = vmul.f32 0.5, %v647_v16 }
 0x33d   : > { %v671_v23 = vmul.f32 %v667_v18, %v655_v14  ;;  %v668_v24 = vmul.f32 %v658_v19, %v658_v19  ;;  %v664_v49 = vmul.f32 0.5, %v658_v19 }
 0x33e   : > { %v669_v25 = vmul.f32 %v665_v21, %v647_v16  ;;  %v666_v26 = vmul.f32 %v650_v22, %v650_v22  ;;  %v662_v51 = vmul.f32 0.5, %v650_v22 }
 0x33f   : > { %v675_v27 = vmul.f32 0.044715, %v671_v23  ;;  %v672_v28 = vmul.f32 %v668_v24, %v658_v19 }
 0x340   : > { %v673_v29 = vmul.f32 0.044715, %v669_v25  ;;  %v670_v30 = vmul.f32 %v666_v26, %v650_v22 }
 0x341   : > { %v679_v31 = vadd.f32 %v675_v27, %v655_v14  ;;  %v676_v32 = vmul.f32 0.044715, %v672_v28 }
 0x342   : > { %v677_v33 = vadd.f32 %v673_v29, %v647_v16  ;;  %v674_v34 = vmul.f32 0.044715, %v670_v30 }
 0x343   : > { %v683_v35 = vmul.f32 0.7978846, %v679_v31  ;;  %v680_v36 = vadd.f32 %v676_v32, %v658_v19 }
 0x344   : > { %v681_v37 = vmul.f32 0.7978846, %v677_v33  ;;  %v678_v38 = vadd.f32 %v674_v34, %v650_v22 }
 0x345   : > { %1466 = vtanh.f32 %v683_v35  ;;  %v684_v39 = vmul.f32 0.7978846, %v680_v36 }
 0x346   : > { %1468 = vtanh.f32 %v681_v37  ;;  %v682_v40 = vmul.f32 0.7978846, %v678_v38 }
 0x347   : > { %1470 = vtanh.f32 %v684_v39 }
 0x348   : > { %1472 = vtanh.f32 %v682_v40 }
 0x34f   : > { %v1467_v41 = vpop.eup %1466 }
 0x350   : > { %v1469_v42 = vpop.eup %1468  ;;  %v691_v43 = vadd.f32 1.0, %v1467_v41 }
 0x351   : > { %v1471_v44 = vpop.eup %1470  ;;  %v689_v46 = vadd.f32 1.0, %v1469_v42 }
 0x352   : > { %v1473_v47 = vpop.eup %1472  ;;  %v692_v50 = vadd.f32 1.0, %v1471_v44  ;;  %v695_v54 = vmul.f32 %v691_v43, %v663_v48 }
 0x353   : > { %v690_v52 = vadd.f32 1.0, %v1473_v47  ;;  %v693_v53 = vmul.f32 %v689_v46, %v661_v45 }
 0x354   : > { %v696_v55 = vmul.f32 %v692_v50, %v664_v49  ;;  %v1871_v60 = vadd.f32 %v695_v54, %v1852_v1  ;;  %v1446_v1 = vld [vmem:[#allocation5 + $0x120] sm:$0xff]  }
 0x355   : > { %v694_v56 = vmul.f32 %v690_v52, %v662_v51  ;;  %v1865_v58 = vadd.f32 %v693_v53, %v1846_v63  ;;  %v1444_v63 = vld [vmem:[#allocation5 + $0x110] sm:$0xff]  }
 0x356   : > { %v1862_v57 = vadd.f32 %v696_v55, %v1843_v62  ;;  %v1443_v62 = vld [vmem:[#allocation5 + $0x108] sm:$0xff]  }
 0x357   : > { %v1868_v59 = vadd.f32 %v694_v56, %v1849_v0  ;;  %1329 = vmatprep.subr.bf16.mxu0 %v1443_v62  ;;  %v1445_v0 = vld [vmem:[#allocation5 + $0x118] sm:$0xff]  }
 0x358   : > { %v702_v2 = vpack.c.bf16 %v1862_v57, %v1871_v60  ;;  %1330 = vmatpush3.bf16.msra.mxu0 %v1443_v62 }
 0x359   : > { %v701_v61 = vpack.c.bf16 %v1868_v59, %v1865_v58  ;;  %1331 = vmatprep.subr.bf16.mxu0 %v1444_v63 }
 0x35b   : > { %1323 = vmatprep.mubr.bf16.mxu1 %v701_v61 }
 0x35c   : > { %1324 = vmatmul.mubr.bf16.vlgmr.msra.gmra.mrb[4].mxu1 %v702_v2  ;;  %1332 = vmatpush3.bf16.msra.mxu0 %v1444_v63  ;;  %v1181_v2 = vld [vmem:[%s1949_s2 + $0x4] ss:$0 sm:$0xff] }
 0x35d   : > { %1333 = vmatprep.subr.bf16.mxu0 %v1445_v0 }
 0x360   : > { %1334 = vmatpush3.bf16.msra.mxu0 %v1445_v0 }
 0x361   : > { %1335 = vmatprep.subr.bf16.mxu0 %v1446_v1 }
 0x364   : > { %1336 = vmatpush3.bf16.msra.mxu0 %v1446_v1 }
 0x365   : > { %1337 = vmatprep.subr.bf16.mxu0 %v1447_v10 }
 0x368   : > { %1338 = vmatpush3.bf16.msra.mxu0 %v1447_v10 }
 0x369   : > { %1339 = vmatprep.subr.bf16.mxu0 %v1448_v3 }
 0x36c   : > { %1340 = vmatpush3.bf16.msra.mxu0 %v1448_v3 }
 0x36d   : > { %1341 = vmatprep.subr.bf16.mxu0 %v1449_v6 }
 0x370   : > { %1342 = vmatpush3.bf16.msra.mxu0 %v1449_v6 }
 0x42f   : > { %v1325_v8 = vpop.f32.mrb[4].mxu1 }
 0x430   : > { %v819_v13 = vadd.f32 %v1325_v8, %v1171_v7  ;;  %v810_v12 = vpop.f32.mrb[5].mxu1 }
 0x431   : > { %v811_v4 = vadd.f32 %v1171_v7, %v810_v12  ;;  %v1326_v5 = vpop.f32.mrb[6].mxu1 }
 0x432   : > { %v831_v11 = vmul.f32 %v819_v13, %v819_v13  ;;  %v822_v14 = vadd.f32 %v1326_v5, %v1171_v7  ;;  %v813_v15 = vpop.f32.mrb[7].mxu1  ;;  %v827_v43 = vmul.f32 0.5, %v819_v13 }
 0x433   : > { %v829_v16 = vmul.f32 %v811_v4, %v811_v4  ;;  %v814_v17 = vadd.f32 %v1171_v7, %v813_v15  ;;  %v825_v40 = vmul.f32 0.5, %v811_v4 }
 0x434   : > { %v835_v18 = vmul.f32 %v831_v11, %v819_v13  ;;  %v832_v19 = vmul.f32 %v822_v14, %v822_v14  ;;  %v828_v44 = vmul.f32 0.5, %v822_v14 }
 0x435   : > { %v833_v20 = vmul.f32 %v829_v16, %v811_v4  ;;  %v830_v21 = vmul.f32 %v814_v17, %v814_v17  ;;  %v826_v46 = vmul.f32 0.5, %v814_v17 }
 0x436   : > { %v839_v22 = vmul.f32 0.044715, %v835_v18  ;;  %v836_v23 = vmul.f32 %v832_v19, %v822_v14 }
 0x437   : > { %v837_v24 = vmul.f32 0.044715, %v833_v20  ;;  %v834_v25 = vmul.f32 %v830_v21, %v814_v17 }
 0x438   : > { %v843_v26 = vadd.f32 %v839_v22, %v819_v13  ;;  %v840_v27 = vmul.f32 0.044715, %v836_v23 }
 0x439   : > { %v841_v28 = vadd.f32 %v837_v24, %v811_v4  ;;  %v838_v29 = vmul.f32 0.044715, %v834_v25 }
 0x43a   : > { %v847_v30 = vmul.f32 0.7978846, %v843_v26  ;;  %v844_v31 = vadd.f32 %v840_v27, %v822_v14 }
 0x43b   : > { %v845_v32 = vmul.f32 0.7978846, %v841_v28  ;;  %v842_v33 = vadd.f32 %v838_v29, %v814_v17 }
 0x43c   : > { %1474 = vtanh.f32 %v847_v30  ;;  %v848_v34 = vmul.f32 0.7978846, %v844_v31 }
 0x43d   : > { %1476 = vtanh.f32 %v845_v32  ;;  %v846_v35 = vmul.f32 0.7978846, %v842_v33 }
 0x43e   : > { %1478 = vtanh.f32 %v848_v34 }
 0x43f   : > { %1480 = vtanh.f32 %v846_v35 }
 0x446   : > { %v1475_v36 = vpop.eup %1474 }
 0x447   : > { %v1477_v37 = vpop.eup %1476  ;;  %v855_v38 = vadd.f32 1.0, %v1475_v36 }
 0x448   : > { %v1479_v39 = vpop.eup %1478  ;;  %v853_v41 = vadd.f32 1.0, %v1477_v37 }
 0x449   : > { %v1481_v42 = vpop.eup %1480  ;;  %v856_v45 = vadd.f32 1.0, %v1479_v39  ;;  %v859_v49 = vmul.f32 %v855_v38, %v827_v43 }
 0x44a   : > { %v854_v47 = vadd.f32 1.0, %v1481_v42  ;;  %v857_v48 = vmul.f32 %v853_v41, %v825_v40 }
 0x44b   : > { %v860_v50 = vmul.f32 %v856_v45, %v828_v44  ;;  %v863_v55 = vadd.f32 %v859_v49, %v1871_v60 }
 0x44c   : > { %v858_v51 = vmul.f32 %v854_v47, %v826_v46  ;;  %v861_v53 = vadd.f32 %v857_v48, %v1865_v58 }
 0x44d   : > { %v1881_v52 = vadd.f32 %v860_v50, %v1862_v57 }
 0x44e   : > { %v1885_v54 = vadd.f32 %v858_v51, %v1868_v59 }
 0x44f   : > { %v866_v61 = vpack.c.bf16 %v1881_v52, %v863_v55 }
 0x450   : > { %v865_v56 = vpack.c.bf16 %v1885_v54, %v861_v53 }
 0x452   : > { %1343 = vmatprep.mubr.bf16.mxu0 %v865_v56 }
 0x453   : > { %1344 = vmatmul.mubr.bf16.vlgmr.msra.gmra.mrb[8].mxu0 %v866_v61 }
 0x526   : > { %v1345_v9 = vpop.f32.mrb[8].mxu0 }
 0x527   : > { %v983_v57 = vadd.f32 %v1345_v9, %v1181_v2  ;;  %v974_v62 = vpop.f32.mrb[9].mxu0 }
 0x528   : > { %v975_v63 = vadd.f32 %v1181_v2, %v974_v62  ;;  %v1346_v58 = vpop.f32.mrb[10].mxu0 }
 0x529   : > { %v995_v0 = vmul.f32 %v983_v57, %v983_v57  ;;  %v986_v59 = vadd.f32 %v1346_v58, %v1181_v2  ;;  %v977_v1 = vpop.f32.mrb[11].mxu0  ;;  %v991_v25 = vmul.f32 0.5, %v983_v57 }
 0x52a   : > { %v993_v10 = vmul.f32 %v975_v63, %v975_v63  ;;  %v978_v60 = vadd.f32 %v1181_v2, %v977_v1  ;;  %v989_v28 = vmul.f32 0.5, %v975_v63 }
 0x52b   : > { %v999_v3 = vmul.f32 %v995_v0, %v983_v57  ;;  %v996_v6 = vmul.f32 %v986_v59, %v986_v59  ;;  %v992_v32 = vmul.f32 0.5, %v986_v59 }
 0x52c   : > { %v997_v7 = vmul.f32 %v993_v10, %v975_v63  ;;  %v994_v8 = vmul.f32 %v978_v60, %v978_v60  ;;  %v990_v35 = vmul.f32 0.5, %v978_v60 }
 0x52d   : > { %v1003_v13 = vmul.f32 0.044715, %v999_v3  ;;  %v1000_v12 = vmul.f32 %v996_v6, %v986_v59 }
 0x52e   : > { %v1001_v4 = vmul.f32 0.044715, %v997_v7  ;;  %v998_v5 = vmul.f32 %v994_v8, %v978_v60 }
 0x52f   : > { %v1007_v11 = vadd.f32 %v1003_v13, %v983_v57  ;;  %v1004_v14 = vmul.f32 0.044715, %v1000_v12 }
 0x530   : > { %v1005_v15 = vadd.f32 %v1001_v4, %v975_v63  ;;  %v1002_v16 = vmul.f32 0.044715, %v998_v5 }
 0x531   : > { %v1011_v17 = vmul.f32 0.7978846, %v1007_v11  ;;  %v1008_v18 = vadd.f32 %v1004_v14, %v986_v59 }
 0x532   : > { %v1009_v19 = vmul.f32 0.7978846, %v1005_v15  ;;  %v1006_v20 = vadd.f32 %v1002_v16, %v978_v60 }
 0x533   : > { %1482 = vtanh.f32 %v1011_v17  ;;  %v1012_v21 = vmul.f32 0.7978846, %v1008_v18 }
 0x534   : > { %1484 = vtanh.f32 %v1009_v19  ;;  %v1010_v22 = vmul.f32 0.7978846, %v1006_v20 }
 0x535   : > { %1486 = vtanh.f32 %v1012_v21 }
 0x536   : > { %1488 = vtanh.f32 %v1010_v22 }
 0x53d   : > { %v1483_v23 = vpop.eup %1482 }
 0x53e   : > { %v1485_v24 = vpop.eup %1484  ;;  %v1019_v26 = vadd.f32 1.0, %v1483_v23 }
 0x53f   : > { %v1487_v27 = vpop.eup %1486  ;;  %v1017_v29 = vadd.f32 1.0, %v1485_v24 }
 0x540   : > { %v1489_v30 = vpop.eup %1488  ;;  %v1023_v31 = vmul.f32 %v1019_v26, %v991_v25  ;;  %v1020_v33 = vadd.f32 1.0, %v1487_v27 }
 0x541   : > { %v1021_v34 = vmul.f32 %v1017_v29, %v989_v28  ;;  %v1018_v36 = vadd.f32 1.0, %v1489_v30 }
 0x542   : > { %v1027_v37 = vadd.f32 %v1023_v31, %v863_v55  ;;  %v1024_v38 = vmul.f32 %v1020_v33, %v992_v32 }
 0x543   : > { %v1025_v39 = vadd.f32 %v1021_v34, %v861_v53  ;;  %v1022_v40 = vmul.f32 %v1018_v36, %v990_v35 }
 0x544   : > { %1031 = vst [vmem:[%s203_s23 + $0x10] sm:$0xff] %v1027_v37  ;;  %v1028_v41 = vadd.f32 %v1024_v38, %v1881_v52 }
 0x545   : > { %1029 = vst [vmem:[%s203_s23] sm:$0xff] %v1025_v39  ;;  %v1026_v42 = vadd.f32 %v1022_v40, %v1885_v54 }
 0x546   : > { %1032 = vst [vmem:[%s203_s23 + $0x18] sm:$0xff] %v1028_v41 }
 0x547   : > { %1030 = vst [vmem:[%s203_s23 + $0x8] sm:$0xff] %v1026_v42 }
 0x548   : > { %1561 = shalt.err (!%p1558_p7)
}
 0x549   : > { %s1562_s25 = scalar_lea.hbm %s1900_s9, 512  ;;  %s1566_s10 = scalar_lea.hbm %s1950_s3, 1024 }
 0x54a   : > { %p1563_p9 = scmp.ne.s32.totalorder %s1900_s9, %s1562_s25  ;;  %p1567_p5 = scmp.lt.u32.totalorder %s1900_s9, %s1950_s3 }
 0x54b   : > { %p1568_p11 = scmp.lt.u32.totalorder %s1566_s10, %s1562_s25  ;;  %p1570_p4 = scmp.lt.u32.totalorder %s1562_s25, %s1900_s9 }
 0x54c   : > { %p1564_p2 = pnand %p1563_p9, %p1740_p12 }
 0x54d   : > { %p1569_p1 = por %p1568_p11, %p1567_p5 }
 0x54e   : > { %p1565_p0 = pneg %p1564_p2 }
 0x54f   : > { %p1571_p6 = por %p1570_p4, %p1569_p1 }
 0x551   : > { %p1572_p8 = pnand %p1571_p6, %p1565_p0 }
 0x553   : > { %1575 = shalt.err (!%p1572_p8)
}
 0x554   : > { %s1627_s28 = smov 128   ;;  %s1628_s29 = smov 8  }
 0x555   : > { %1353 = dma.vmem_to_hbm [thread:$0]  (%p1740_p12), %s1902_s30, 512, %s1900_s9, %s1034_s16, %s1627_s28, %s1627_s28, %s1628_s29  }
 0x556 PF: > { %s1062_s23 = sand.u32 1, %s1606_s12   ;;  %p1965_p10 = scmp.ne.s32.totalorder %s1955_s19, 0 }
 0x557   : > { %p1966_p13 = scmp.ge.s32.totalorder %s1618_s15, 2  ;;  %s1063_s22 = scalar_lea.sflag [#allocation4], %s1062_s23 }
 0x559   : > { %p1364_p3 = pnand %p1966_p13, %p1965_p10 }
 0x55b   : > { %1601 = dma.done.wait (!%p1364_p3), %s1063_s22, 512  }
 0x55c   : > { %1603 = vsyncadd (!%p1364_p3), %s1063_s22, 4294966784  ;;  %p17_p7 = scmp.ge.s32.totalorder %s1705_s24, 4   ;;  %s1967_s12 = smov %s1610_s13 }
 0x55d   : > { %s1968_s13 = smov %s1614_s14  ;;  %s1969_s14 = smov %s1736_s17 }
 0x55e   : > { %s1970_s15 = smov %s1705_s24  ;;  %19 = sbr.rel (!%p17_p7) target bundleno = 6 (0x6), region = 89 }
 0x565   :  { %1068 = vsyncpa [#allocation3], 1 }
 0x566   :  { %1070 = vsyncpa [#allocation3 + $0x1], 1 }
 0x567   :  { %1071 = vsyncpa [#allocation6], 1 }
 0x568   :  { %1072 = vsyncpa [#allocation4], 1 }
 0x569   :  { %1074 = vsyncpa [#allocation4 + $0x1], 1 }

</bundles_post_ra>
